<compile_context>
chip_gen: v7x
topology: tpu7x:2x2x1
jax: 0.10.0
libtpu: 0.0.40
codegen_flags: <defaults>
</compile_context>

<pallas_src>
import functools

import jax
import jax.numpy as jnp
from jax.experimental import pallas as pl
from jax.experimental.pallas import tpu as pltpu

INPUT_SIZE = 784
HIDDEN_SIZE = 500
NUM_CLASSES = 10

# Lane-dense padded dims (multiples of 128).
HIDDEN_PAD = 512
OUT_PAD = 128


def _sigmoid(z):
    # exp -> EUP; approx reciprocal -> EUP as well (instead of a precise VPU
    # divide), keeping the VALU slots free for the bias adds.
    return pl.reciprocal(1.0 + jnp.exp(-z), approx=True)


def _mlp_kernel(x_ref, w1_ref, b1_ref, w2_ref, b2_ref, w3_ref, b3_ref, o_ref):
    """Fused 3-layer MLP forward for one batch tile (all dims lane-dense).

    Weights (~1.4 MB bf16 / ~2.9 MB f32 total) are resident full blocks in
    VMEM; the three matmuls hit the MXU with f32 accumulation.
    """
    x = x_ref[...]                                                  # (tb, 784)

    z1 = jnp.dot(x, w1_ref[...], preferred_element_type=jnp.float32)
    h1 = _sigmoid(z1 + b1_ref[...])                                 # (tb, 512) f32

    z2 = jnp.dot(h1.astype(w2_ref.dtype), w2_ref[...],
                 preferred_element_type=jnp.float32)
    h2 = _sigmoid(z2 + b2_ref[...])                                 # (tb, 512) f32

    z3 = jnp.dot(h2.astype(w3_ref.dtype), w3_ref[...],
                 preferred_element_type=jnp.float32)
    o_ref[...] = (z3 + b3_ref[...]).astype(o_ref.dtype)             # (tb, 128)


@functools.partial(jax.jit, static_argnames=("block_b", "compute_dtype"))
def neural_net_forward(x, params, block_b=256, compute_dtype=jnp.bfloat16):
    """Runs the fused MLP kernel over the batch dimension.

    x:      (B, 784) float32
    params: dict with w1 (784,500), b1 (500,), w2 (500,500), b2 (500,),
            w3 (500,10), b3 (10,) -- already in (in, out) layout.
    block_b: batch tile (multiple of 8). Pick 128 on v5e, 256 on v6e/v7x.
    compute_dtype: matmul input dtype (bf16 for v6e/v7x MXU peak, f32 for
                   bit-accurate checking). Accumulation is always f32.
    """
    B, D = x.shape
    assert D == INPUT_SIZE
    assert block_b % 8 == 0, "block_b must be a multiple of 8 (sublane tiling)"

    # Ragged batch: pad up to a multiple of block_b, slice the result after.
    b_pad = pl.cdiv(B, block_b) * block_b
    x_p = jnp.pad(x, ((0, b_pad - B), (0, 0))).astype(compute_dtype)

    # Zero-pad hidden 500->512 and output 10->128. Padded weight rows/cols and
    # bias entries are zero, so the extra lanes are numerically inert
    # (sigmoid(0)=0.5 on padded hidden lanes multiplies zero weight rows).
    hp = HIDDEN_PAD - HIDDEN_SIZE
    op = OUT_PAD - NUM_CLASSES
    w1 = jnp.pad(params["w1"], ((0, 0), (0, hp))).astype(compute_dtype)
    w2 = jnp.pad(params["w2"], ((0, hp), (0, hp))).astype(compute_dtype)
    w3 = jnp.pad(params["w3"], ((0, hp), (0, op))).astype(compute_dtype)
    b1 = jnp.pad(params["b1"], (0, hp)).reshape(1, HIDDEN_PAD).astype(jnp.float32)
    b2 = jnp.pad(params["b2"], (0, hp)).reshape(1, HIDDEN_PAD).astype(jnp.float32)
    b3 = jnp.pad(params["b3"], (0, op)).reshape(1, OUT_PAD).astype(jnp.float32)

    grid = (b_pad // block_b,)
    full = lambda i: (0, 0)  # weights/biases: same resident block every tile

    itemsize = jnp.dtype(compute_dtype).itemsize
    cost = pl.CostEstimate(
        flops=2 * b_pad * (INPUT_SIZE * HIDDEN_PAD
                           + HIDDEN_PAD * HIDDEN_PAD
                           + HIDDEN_PAD * OUT_PAD),
        transcendentals=2 * b_pad * HIDDEN_PAD,
        bytes_accessed=(x_p.size * itemsize
                        + (w1.size + w2.size + w3.size) * itemsize
                        + (b1.size + b2.size + b3.size) * 4
                        + b_pad * OUT_PAD * 4),
    )

    out_padded = pl.pallas_call(
        _mlp_kernel,
        out_shape=jax.ShapeDtypeStruct((b_pad, OUT_PAD), jnp.float32),
        grid_spec=pltpu.PrefetchScalarGridSpec(
            num_scalar_prefetch=0,
            grid=grid,
            in_specs=[
                pl.BlockSpec((block_b, INPUT_SIZE), lambda i: (i, 0)),  # x tile
                pl.BlockSpec((INPUT_SIZE, HIDDEN_PAD), full),           # w1
                pl.BlockSpec((1, HIDDEN_PAD), full),                    # b1
                pl.BlockSpec((HIDDEN_PAD, HIDDEN_PAD), full),           # w2
                pl.BlockSpec((1, HIDDEN_PAD), full),                    # b2
                pl.BlockSpec((HIDDEN_PAD, OUT_PAD), full),              # w3
                pl.BlockSpec((1, OUT_PAD), full),                       # b3
            ],
            out_specs=pl.BlockSpec((block_b, OUT_PAD), lambda i: (i, 0)),
        ),
        compiler_params=pltpu.CompilerParams(
            dimension_semantics=("parallel",),
        ),
        cost_estimate=cost,
    )(x_p, w1, b1, w2, b2, w3, b3)

    return out_padded[:B, :NUM_CLASSES]


def init_params(key):
    """PyTorch nn.Linear-style init; weights returned transposed to (in, out)."""
    ks = jax.random.split(key, 6)

    def linear(kw, kb, fan_in, fan_out):
        bound = 1.0 / jnp.sqrt(fan_in)
        w = jax.random.uniform(kw, (fan_out, fan_in), jnp.float32, -bound, bound)
        b = jax.random.uniform(kb, (fan_out,), jnp.float32, -bound, bound)
        return w.T, b

    w1, b1 = linear(ks[0], ks[1], INPUT_SIZE, HIDDEN_SIZE)
    w2, b2 = linear(ks[2], ks[3], HIDDEN_SIZE, HIDDEN_SIZE)
    w3, b3 = linear(ks[4], ks[5], HIDDEN_SIZE, NUM_CLASSES)
    return {"w1": w1, "b1": b1, "w2": w2, "b2": b2, "w3": w3, "b3": b3}


def reference_forward(x, params):
    """Plain-JAX f32 reference of the PyTorch forward."""
    h1 = jax.nn.sigmoid(x @ params["w1"] + params["b1"])
    h2 = jax.nn.sigmoid(h1 @ params["w2"] + params["b2"])
    return h2 @ params["w3"] + params["b3"]


if __name__ == "__main__":
    key = jax.random.PRNGKey(0)
    k_params, k_x = jax.random.split(key)

    params = init_params(k_params)

    # Deliberately ragged small batch: wrapper pads to a multiple of block_b.
    # block_b=32 keeps the toy test small while still giving a 2-tile grid
    # (so v7x's two TensorCores both get work). Production: block_b=128..256.
    batch = 50
    x = jax.random.normal(k_x, (batch, INPUT_SIZE), dtype=jnp.float32)
    ref = reference_forward(x, params)

    # Production-style bf16 path (f32 accumulation).
    out_bf16 = jax.block_until_ready(
        neural_net_forward(x, params, block_b=32, compute_dtype=jnp.bfloat16))
    assert out_bf16.shape == (batch, NUM_CLASSES)
    assert jnp.allclose(out_bf16, ref, atol=5e-2, rtol=5e-2), "bf16 path mismatch"

    # f32 path, tighter tolerance (only approx-reciprocal sigmoid differs).
    out_f32 = jax.block_until_ready(
        neural_net_forward(x, params, block_b=32, compute_dtype=jnp.float32))
    assert out_f32.shape == (batch, NUM_CLASSES)
    assert jnp.allclose(out_f32, ref, atol=5e-3, rtol=5e-3), "f32 path mismatch"

    print("KERNEL_OK")
</pallas_src>

<mosaic_0001>
module attributes {stable_mosaic.version = 11 : i64} {
  func.func @_mlp_kernel(%arg0: i32, %arg1: memref<32x784xbf16, #tpu.memory_space<vmem>>, %arg2: memref<784x512xbf16, #tpu.memory_space<vmem>>, %arg3: memref<1x512xf32, #tpu.memory_space<vmem>>, %arg4: memref<512x512xbf16, #tpu.memory_space<vmem>>, %arg5: memref<1x512xf32, #tpu.memory_space<vmem>>, %arg6: memref<512x128xbf16, #tpu.memory_space<vmem>>, %arg7: memref<1x128xf32, #tpu.memory_space<vmem>>, %arg8: memref<32x128xf32, #tpu.memory_space<vmem>>) attributes {dimension_semantics = [#tpu.dimension_semantics<parallel>], iteration_bounds = array<i64: 2>, scalar_prefetch = 0 : i64, scratch_operands = 0 : i64, tpu.core_type = #tpu.core_type<tc>, window_params = [{transform_indices = @transform_0, window_bounds = array<i64: 32, 784>}, {pipeline_mode = #tpu.pipeline_mode<synchronous>, transform_indices = @transform_1, window_bounds = array<i64: 784, 512>}, {pipeline_mode = #tpu.pipeline_mode<synchronous>, transform_indices = @transform_2, window_bounds = array<i64: 1, 512>}, {pipeline_mode = #tpu.pipeline_mode<synchronous>, transform_indices = @transform_3, window_bounds = array<i64: 512, 512>}, {pipeline_mode = #tpu.pipeline_mode<synchronous>, transform_indices = @transform_4, window_bounds = array<i64: 1, 512>}, {pipeline_mode = #tpu.pipeline_mode<synchronous>, transform_indices = @transform_5, window_bounds = array<i64: 512, 128>}, {pipeline_mode = #tpu.pipeline_mode<synchronous>, transform_indices = @transform_6, window_bounds = array<i64: 1, 128>}, {transform_indices = @transform_7, window_bounds = array<i64: 32, 128>}]} {
    %c0 = arith.constant 0 : index
    %c0_0 = arith.constant 0 : index
    %0 = vector.load %arg1[%c0, %c0_0] : memref<32x784xbf16, #tpu.memory_space<vmem>>, vector<32x784xbf16>
    %c0_1 = arith.constant 0 : index
    %c0_2 = arith.constant 0 : index
    %1 = vector.load %arg2[%c0_1, %c0_2] : memref<784x512xbf16, #tpu.memory_space<vmem>>, vector<784x512xbf16>
    %cst = arith.constant dense<0.000000e+00> : vector<32x512xf32>
    %2 = tpu.matmul %0, %1, %cst {dimension_numbers = #tpu.dot_dimension_numbers<[1], [0], [0], [1], [0, 0, 1, 1], [], []>} : vector<32x784xbf16>, vector<784x512xbf16>, vector<32x512xf32> -> vector<32x512xf32>
    %c0_3 = arith.constant 0 : index
    %c0_4 = arith.constant 0 : index
    %3 = vector.load %arg3[%c0_3, %c0_4] : memref<1x512xf32, #tpu.memory_space<vmem>>, vector<1x512xf32>
    %4 = vector.broadcast %3 : vector<1x512xf32> to vector<32x512xf32>
    %5 = arith.addf %2, %4 : vector<32x512xf32>
    %cst_5 = arith.constant 0.000000e+00 : f32
    %6 = vector.broadcast %cst_5 : f32 to vector<32x512xf32>
    %7 = arith.subf %6, %5 : vector<32x512xf32>
    %8 = math.exp %7 : vector<32x512xf32>
    %cst_6 = arith.constant 1.000000e+00 : f32
    %9 = vector.broadcast %cst_6 : f32 to vector<32x512xf32>
    %10 = arith.addf %9, %8 : vector<32x512xf32>
    %11 = tpu.reciprocal %10 {approx = true} : vector<32x512xf32> -> vector<32x512xf32>
    %12 = arith.truncf %11 : vector<32x512xf32> to vector<32x512xbf16>
    %c0_7 = arith.constant 0 : index
    %c0_8 = arith.constant 0 : index
    %13 = vector.load %arg4[%c0_7, %c0_8] : memref<512x512xbf16, #tpu.memory_space<vmem>>, vector<512x512xbf16>
    %cst_9 = arith.constant dense<0.000000e+00> : vector<32x512xf32>
    %14 = tpu.matmul %12, %13, %cst_9 {dimension_numbers = #tpu.dot_dimension_numbers<[1], [0], [0], [1], [0, 0, 1, 1], [], []>} : vector<32x512xbf16>, vector<512x512xbf16>, vector<32x512xf32> -> vector<32x512xf32>
    %c0_10 = arith.constant 0 : index
    %c0_11 = arith.constant 0 : index
    %15 = vector.load %arg5[%c0_10, %c0_11] : memref<1x512xf32, #tpu.memory_space<vmem>>, vector<1x512xf32>
    %16 = vector.broadcast %15 : vector<1x512xf32> to vector<32x512xf32>
    %17 = arith.addf %14, %16 : vector<32x512xf32>
    %cst_12 = arith.constant 0.000000e+00 : f32
    %18 = vector.broadcast %cst_12 : f32 to vector<32x512xf32>
    %19 = arith.subf %18, %17 : vector<32x512xf32>
    %20 = math.exp %19 : vector<32x512xf32>
    %cst_13 = arith.constant 1.000000e+00 : f32
    %21 = vector.broadcast %cst_13 : f32 to vector<32x512xf32>
    %22 = arith.addf %21, %20 : vector<32x512xf32>
    %23 = tpu.reciprocal %22 {approx = true} : vector<32x512xf32> -> vector<32x512xf32>
    %24 = arith.truncf %23 : vector<32x512xf32> to vector<32x512xbf16>
    %c0_14 = arith.constant 0 : index
    %c0_15 = arith.constant 0 : index
    %25 = vector.load %arg6[%c0_14, %c0_15] : memref<512x128xbf16, #tpu.memory_space<vmem>>, vector<512x128xbf16>
    %cst_16 = arith.constant dense<0.000000e+00> : vector<32x128xf32>
    %26 = tpu.matmul %24, %25, %cst_16 {dimension_numbers = #tpu.dot_dimension_numbers<[1], [0], [0], [1], [0, 0, 1, 1], [], []>} : vector<32x512xbf16>, vector<512x128xbf16>, vector<32x128xf32> -> vector<32x128xf32>
    %c0_17 = arith.constant 0 : index
    %c0_18 = arith.constant 0 : index
    %27 = vector.load %arg7[%c0_17, %c0_18] : memref<1x128xf32, #tpu.memory_space<vmem>>, vector<1x128xf32>
    %28 = vector.broadcast %27 : vector<1x128xf32> to vector<32x128xf32>
    %29 = arith.addf %26, %28 : vector<32x128xf32>
    %c0_19 = arith.constant 0 : index
    %c0_20 = arith.constant 0 : index
    %30 = vector.load %arg8[%c0_19, %c0_20] : memref<32x128xf32, #tpu.memory_space<vmem>>, vector<32x128xf32>
    tpu.vector_store %arg8[%c0_19, %c0_20], %29 {strides = array<i32>} : memref<32x128xf32, #tpu.memory_space<vmem>>, vector<32x128xf32>,
    return
  }
  func.func @transform_0(%arg0: i32) -> (i32, i32) {
    %c0_i32 = arith.constant 0 : i32
    %c0_i32_0 = arith.constant 0 : i32
    return %arg0, %c0_i32 : i32, i32
  }
  func.func @transform_1(%arg0: i32) -> (i32, i32) {
    %c0_i32 = arith.constant 0 : i32
    %c0_i32_0 = arith.constant 0 : i32
    %c0_i32_1 = arith.constant 0 : i32
    return %c0_i32, %c0_i32_0 : i32, i32
  }
  func.func @transform_2(%arg0: i32) -> (i32, i32) {
    %c0_i32 = arith.constant 0 : i32
    %c0_i32_0 = arith.constant 0 : i32
    %c0_i32_1 = arith.constant 0 : i32
    return %c0_i32, %c0_i32_0 : i32, i32
  }
  func.func @transform_3(%arg0: i32) -> (i32, i32) {
    %c0_i32 = arith.constant 0 : i32
    %c0_i32_0 = arith.constant 0 : i32
    %c0_i32_1 = arith.constant 0 : i32
    return %c0_i32, %c0_i32_0 : i32, i32
  }
  func.func @transform_4(%arg0: i32) -> (i32, i32) {
    %c0_i32 = arith.constant 0 : i32
    %c0_i32_0 = arith.constant 0 : i32
    %c0_i32_1 = arith.constant 0 : i32
    return %c0_i32, %c0_i32_0 : i32, i32
  }
  func.func @transform_5(%arg0: i32) -> (i32, i32) {
    %c0_i32 = arith.constant 0 : i32
    %c0_i32_0 = arith.constant 0 : i32
    %c0_i32_1 = arith.constant 0 : i32
    return %c0_i32, %c0_i32_0 : i32, i32
  }
  func.func @transform_6(%arg0: i32) -> (i32, i32) {
    %c0_i32 = arith.constant 0 : i32
    %c0_i32_0 = arith.constant 0 : i32
    %c0_i32_1 = arith.constant 0 : i32
    return %c0_i32, %c0_i32_0 : i32, i32
  }
  func.func @transform_7(%arg0: i32) -> (i32, i32) {
    %c0_i32 = arith.constant 0 : i32
    %c0_i32_0 = arith.constant 0 : i32
    return %arg0, %c0_i32 : i32, i32
  }
}

</mosaic_0001>

<bundles_post_ra>
// kernel: neural_net_forward.1
= control target key start
LH: loop header
LB: loop body
LE: loop exit
PB: predicated region body
PF: predicated region fallthrough
CT: control target
= control target key end

     0   :  { %s4863_s24 = smov 0   ;;  %s6057_s0 = inlined_call_operand.vmem [shape: bf16[64,784], index: 0, kind: input, shape index: {}]   ;;  %s6058_s1 = inlined_call_operand.vmem [shape: bf16[784,512], index: 1, kind: input, shape index: {}]   ;;  %s6059_s2 = inlined_call_operand.vmem [shape: f32[1,512], index: 2, kind: input, shape index: {}]   ;;  %s6060_s3 = inlined_call_operand.vmem [shape: bf16[512,512], index: 3, kind: input, shape index: {}]   ;;  %s6061_s4 = inlined_call_operand.vmem [shape: f32[1,512], index: 4, kind: input, shape index: {}]   ;;  %s6062_s5 = inlined_call_operand.vmem [shape: bf16[512,128], index: 5, kind: input, shape index: {}]   ;;  %s6063_s6 = inlined_call_operand.vmem [shape: f32[1,128], index: 6, kind: input, shape index: {}]   ;;  %s6064_s7 = inlined_call_operand.vmem [shape: f32[64,128], index: 7, kind: output, shape index: {}]  }
   0x1 LB: > { %s3600_s25 = sadd.s32 4294967295, %s4820_s24   ;;  %p3604_p0 = scmp.ge.s32.totalorder %s4820_s24, 1  ;;  %s4820_s24 = sphi %s4863_s24, %s17_s24  }
   0x2   : > { %p239_p1 = scmp.lt.s32.totalorder %s4820_s24, 3 }
   0x4   : > { %p240_p2 = pnand %p3604_p0, %p239_p1 }
   0x5   : > { %v4148_v0 = vld [vmem:[%s6058_s1 + $0x4] ss:$16 sps:$4 sm:$0xff] (!%p240_p2)   ;;  %v4150_v1 = vld [vmem:[%s6058_s1 + $0xc] ss:$16 sps:$4 sm:$0xff] (!%p240_p2)   ;;  %v4152_v2 = vld [vmem:[%s6058_s1] ss:$16 sps:$4 sm:$0xff] (!%p240_p2)  }
   0x6   : > { %243 = sbr.rel (%p240_p2) target bundleno = 1023 (0x3ff), region = 48  ;;  %1577 = vmatprep.subr.bf16.mxu0 (!%p240_p2), %v4148_v0  ;;  %v4153_v3 = vld [vmem:[%s6058_s1 + $0x8] ss:$16 sps:$4 sm:$0xff] (!%p240_p2)   ;;  %1789 = vmatprep.subr.bf16.mxu1 (!%p240_p2), %v4150_v1  ;;  %v4154_v4 = vld [vmem:[%s6058_s1 + $0x24] ss:$16 sps:$4 sm:$0xff] (!%p240_p2)   ;;  %s3605_s21 = sshll.u32 (!%p240_p2), %s3600_s25, 2 }
   0x7   : > { %1578 = vmatpush1.bf16.msra.mxu0 (!%p240_p2), %v4152_v2  ;;  %1790 = vmatpush1.bf16.msra.mxu1 (!%p240_p2), %v4153_v3  ;;  %v4156_v5 = vld [vmem:[%s6058_s1 + $0x2c] ss:$16 sps:$4 sm:$0xff] (!%p240_p2)   ;;  %v4158_v6 = vld [vmem:[%s6058_s1 + $0x20] ss:$16 sps:$4 sm:$0xff] (!%p240_p2)   ;;  %v4159_v7 = vld [vmem:[%s6058_s1 + $0x28] ss:$16 sps:$4 sm:$0xff] (!%p240_p2)  }
   0x8   : > { %1579 = vmatprep.subr.bf16.mxu0 (!%p240_p2), %v4154_v4  ;;  %1791 = vmatprep.subr.bf16.mxu1 (!%p240_p2), %v4156_v5  ;;  %v4160_v8 = vld [vmem:[%s6058_s1 + $0x44] ss:$16 sps:$4 sm:$0xff] (!%p240_p2)   ;;  %v4162_v9 = vld [vmem:[%s6058_s1 + $0x4c] ss:$16 sps:$4 sm:$0xff] (!%p240_p2)   ;;  %v4164_v10 = vld [vmem:[%s6058_s1 + $0x40] ss:$16 sps:$4 sm:$0xff] (!%p240_p2)  }
   0x9   : > { %v4165_v11 = vld [vmem:[%s6058_s1 + $0x48] ss:$16 sps:$4 sm:$0xff] (!%p240_p2)   ;;  %v4166_v12 = vld [vmem:[%s6058_s1 + $0x64] ss:$16 sps:$4 sm:$0xff] (!%p240_p2)   ;;  %v4168_v13 = vld [vmem:[%s6058_s1 + $0x6c] ss:$16 sps:$4 sm:$0xff] (!%p240_p2)  }
   0xa   : > { %v4170_v14 = vld [vmem:[%s6058_s1 + $0x60] ss:$16 sps:$4 sm:$0xff] (!%p240_p2)   ;;  %v4171_v15 = vld [vmem:[%s6058_s1 + $0x68] ss:$16 sps:$4 sm:$0xff] (!%p240_p2)   ;;  %v4172_v16 = vld [vmem:[%s6058_s1 + $0x84] ss:$16 sps:$4 sm:$0xff] (!%p240_p2)  }
   0xb   : > { %1580 = vmatpush1.bf16.msra.mxu0 (!%p240_p2), %v4158_v6  ;;  %1792 = vmatpush1.bf16.msra.mxu1 (!%p240_p2), %v4159_v7  ;;  %v4174_v17 = vld [vmem:[%s6058_s1 + $0x8c] ss:$16 sps:$4 sm:$0xff] (!%p240_p2)   ;;  %v4176_v18 = vld [vmem:[%s6058_s1 + $0x80] ss:$16 sps:$4 sm:$0xff] (!%p240_p2)   ;;  %v4177_v19 = vld [vmem:[%s6058_s1 + $0x88] ss:$16 sps:$4 sm:$0xff] (!%p240_p2)  }
   0xc   : > { %1581 = vmatprep.subr.bf16.mxu0 (!%p240_p2), %v4160_v8  ;;  %1793 = vmatprep.subr.bf16.mxu1 (!%p240_p2), %v4162_v9  ;;  %v4178_v20 = vld [vmem:[%s6058_s1 + $0xa4] ss:$16 sps:$4 sm:$0xff] (!%p240_p2)   ;;  %v4180_v21 = vld [vmem:[%s6058_s1 + $0xac] ss:$16 sps:$4 sm:$0xff] (!%p240_p2)   ;;  %v4182_v22 = vld [vmem:[%s6058_s1 + $0xa0] ss:$16 sps:$4 sm:$0xff] (!%p240_p2)  }
   0xd   : > { %v4183_v23 = vld [vmem:[%s6058_s1 + $0xa8] ss:$16 sps:$4 sm:$0xff]   ;;  %v4184_v24 = vld [vmem:[%s6058_s1 + $0xc4] ss:$16 sps:$4 sm:$0xff]   ;;  %v4186_v25 = vld [vmem:[%s6058_s1 + $0xcc] ss:$16 sps:$4 sm:$0xff]  }
   0xe   : > { %v4188_v26 = vld [vmem:[%s6058_s1 + $0xc0] ss:$16 sps:$4 sm:$0xff]   ;;  %v4189_v27 = vld [vmem:[%s6058_s1 + $0xc8] ss:$16 sps:$4 sm:$0xff]   ;;  %v4190_v28 = vld [vmem:[%s6058_s1 + $0xe4] ss:$16 sps:$4 sm:$0xff]  }
   0xf   : > { %1582 = vmatpush1.bf16.msra.mxu0 %v4164_v10  ;;  %1794 = vmatpush1.bf16.msra.mxu1 %v4165_v11  ;;  %v4192_v29 = vld [vmem:[%s6058_s1 + $0xec] ss:$16 sps:$4 sm:$0xff]   ;;  %v4194_v30 = vld [vmem:[%s6058_s1 + $0xe0] ss:$16 sps:$4 sm:$0xff]   ;;  %v4195_v31 = vld [vmem:[%s6058_s1 + $0xe8] ss:$16 sps:$4 sm:$0xff]  }
  0x10   : > { %1583 = vmatprep.subr.bf16.mxu0 %v4166_v12  ;;  %1795 = vmatprep.subr.bf16.mxu1 %v4168_v13  ;;  %v4196_v32 = vld [vmem:[%s6058_s1 + $0x104] ss:$16 sps:$4 sm:$0xff]   ;;  %p273_p3 = scmp.lt.s32.totalorder %s3605_s21, 7  ;;  %v4198_v33 = vld [vmem:[%s6058_s1 + $0x10c] ss:$16 sps:$4 sm:$0xff]   ;;  %vm1570_vm0 = vcmask 130048  }
  0x11   : > { %v4200_v34 = vld [vmem:[%s6058_s1 + $0x100] ss:$16 sps:$4 sm:$0xff]   ;;  %v4201_v35 = vld [vmem:[%s6058_s1 + $0x108] ss:$16 sps:$4 sm:$0xff]   ;;  %v4202_v36 = vld [vmem:[%s6058_s1 + $0x124] ss:$16 sps:$4 sm:$0xff]  }
  0x12   : > { %s6066_s21 = smov (!%p273_p3, %s3605_s21), 7  ;;  %v4204_v37 = vld [vmem:[%s6058_s1 + $0x12c] ss:$16 sps:$4 sm:$0xff]   ;;  %v4206_v38 = vld [vmem:[%s6058_s1 + $0x120] ss:$16 sps:$4 sm:$0xff]  }
  0x13   : > { %1584 = vmatpush1.bf16.msra.mxu0 %v4170_v14  ;;  %1796 = vmatpush1.bf16.msra.mxu1 %v4171_v15  ;;  %v4207_v39 = vld [vmem:[%s6058_s1 + $0x128] ss:$16 sps:$4 sm:$0xff]   ;;  %v4208_v40 = vld [vmem:[%s6058_s1 + $0x144] ss:$16 sps:$4 sm:$0xff]   ;;  %s4138_s23 = smul.u32 28, %s6066_s21  ;;  %s3608_s29 = sshll.u32 %s6066_s21, 3 }
  0x14   : > { %1585 = vmatprep.subr.bf16.mxu0 %v4172_v16  ;;  %1797 = vmatprep.subr.bf16.mxu1 %v4174_v17  ;;  %v4210_v41 = vld [vmem:[%s6058_s1 + $0x14c] ss:$16 sps:$4 sm:$0xff]   ;;  %v4212_v42 = vld [vmem:[%s6058_s1 + $0x140] ss:$16 sps:$4 sm:$0xff]   ;;  %v4213_v43 = vld [vmem:[%s6058_s1 + $0x148] ss:$16 sps:$4 sm:$0xff]   ;;  %s283_s25 = scalar_lea.vmem %s6064_s7, %s3608_s29 }
  0x15   : > { %v4214_v44 = vld [vmem:[%s6058_s1 + $0x164] ss:$16 sps:$4 sm:$0xff]   ;;  %s5014_s12 = scalar_lea.vmem %s6057_s0, %s4138_s23  ;;  %v4216_v45 = vld [vmem:[%s6058_s1 + $0x16c] ss:$16 sps:$4 sm:$0xff]   ;;  %v4218_v46 = vld [vmem:[%s6058_s1 + $0x160] ss:$16 sps:$4 sm:$0xff]  }
  0x16   : > { %v4219_v47 = vld [vmem:[%s6058_s1 + $0x168] ss:$16 sps:$4 sm:$0xff]   ;;  %v4246_v48 = vld [vmem:[%s5014_s12 + $0x4] ss:$28 sps:$4 sm:$0xff]   ;;  %v4222_v50 = vld [vmem:[%s6058_s1 + $0x18c] ss:$16 sps:$4 sm:$0xff]  }
  0x17   : > { %1586 = vmatpush1.bf16.msra.mxu0 %v4176_v18  ;;  %1798 = vmatpush1.bf16.msra.mxu1 %v4177_v19  ;;  %v4220_v49 = vld [vmem:[%s6058_s1 + $0x184] ss:$16 sps:$4 sm:$0xff]   ;;  %v4224_v51 = vld [vmem:[%s6058_s1 + $0x180] ss:$16 sps:$4 sm:$0xff]   ;;  %v4225_v52 = vld [vmem:[%s6058_s1 + $0x188] ss:$16 sps:$4 sm:$0xff]  }
  0x18   : > { %1587 = vmatprep.subr.bf16.mxu0 %v4178_v20  ;;  %1799 = vmatprep.subr.bf16.mxu1 %v4180_v21  ;;  %v4226_v53 = vld [vmem:[%s6058_s1 + $0x1a4] ss:$16 sps:$4 sm:$0xff]   ;;  %v4228_v54 = vld [vmem:[%s6058_s1 + $0x1ac] ss:$16 sps:$4 sm:$0xff]   ;;  %v4230_v55 = vld [vmem:[%s6058_s1 + $0x1a0] ss:$16 sps:$4 sm:$0xff]  }
  0x19   : > { %1609 = vmatprep.mubr.bf16.mxu0 %v4246_v48  ;;  %1821 = vmatprep.mubr.bf16.mxu1 %v4246_v48  ;;  %v4231_v56 = vld [vmem:[%s6058_s1 + $0x1a8] ss:$16 sps:$4 sm:$0xff]   ;;  %v4232_v57 = vld [vmem:[%s6058_s1 + $0x1c4] ss:$16 sps:$4 sm:$0xff]   ;;  %v4234_v58 = vld [vmem:[%s6058_s1 + $0x1cc] ss:$16 sps:$4 sm:$0xff]  }
  0x1a   : > { %v4236_v59 = vld [vmem:[%s6058_s1 + $0x1c0] ss:$16 sps:$4 sm:$0xff]   ;;  %v4237_v60 = vld [vmem:[%s6058_s1 + $0x1c8] ss:$16 sps:$4 sm:$0xff]   ;;  %v4238_v61 = vld [vmem:[%s6058_s1 + $0x1e4] ss:$16 sps:$4 sm:$0xff]  }
  0x1b   : > { %1588 = vmatpush1.bf16.msra.mxu0 %v4182_v22  ;;  %1800 = vmatpush1.bf16.msra.mxu1 %v4183_v23  ;;  %v4240_v62 = vld [vmem:[%s6058_s1 + $0x1ec] ss:$16 sps:$4 sm:$0xff]   ;;  %v4242_v63 = vld [vmem:[%s6058_s1 + $0x1e0] ss:$16 sps:$4 sm:$0xff]   ;;  %v4243_v0 = vld [vmem:[%s6058_s1 + $0x1e8] ss:$16 sps:$4 sm:$0xff]  }
  0x1c   : > { %1589 = vmatprep.subr.bf16.mxu0 %v4184_v24  ;;  %1801 = vmatprep.subr.bf16.mxu1 %v4186_v25  ;;  %v4249_v1 = vld [vmem:[%s6058_s1 + $0x204] ss:$16 sps:$4 sm:$0xff]   ;;  %v4252_v2 = vld [vmem:[%s6058_s1 + $0x20c] ss:$16 sps:$4 sm:$0xff]   ;;  %v4247_v4 = vld [vmem:[%s6058_s1 + $0x200] ss:$16 sps:$4 sm:$0xff]  }
  0x1d   : > { %v4244_v3 = vld [vmem:[%s5014_s12] ss:$28 sps:$4 sm:$0xff]   ;;  %v4250_v5 = vld [vmem:[%s6058_s1 + $0x208] ss:$16 sps:$4 sm:$0xff]   ;;  %v4255_v6 = vld [vmem:[%s6058_s1 + $0x224] ss:$16 sps:$4 sm:$0xff]  }
  0x1e   : > { %v4258_v7 = vld [vmem:[%s6058_s1 + $0x22c] ss:$16 sps:$4 sm:$0xff]   ;;  %v4253_v8 = vld [vmem:[%s6058_s1 + $0x220] ss:$16 sps:$4 sm:$0xff]   ;;  %v4256_v9 = vld [vmem:[%s6058_s1 + $0x228] ss:$16 sps:$4 sm:$0xff]  }
  0x1f   : > { %1590 = vmatpush1.bf16.msra.mxu0 %v4188_v26  ;;  %1802 = vmatpush1.bf16.msra.mxu1 %v4189_v27  ;;  %v4261_v10 = vld [vmem:[%s6058_s1 + $0x244] ss:$16 sps:$4 sm:$0xff]   ;;  %v4264_v11 = vld [vmem:[%s6058_s1 + $0x24c] ss:$16 sps:$4 sm:$0xff]   ;;  %v4259_v12 = vld [vmem:[%s6058_s1 + $0x240] ss:$16 sps:$4 sm:$0xff]  }
  0x20   : > { %1591 = vmatprep.subr.bf16.mxu0 %v4190_v28  ;;  %1803 = vmatprep.subr.bf16.mxu1 %v4192_v29  ;;  %v4262_v13 = vld [vmem:[%s6058_s1 + $0x248] ss:$16 sps:$4 sm:$0xff]   ;;  %v4267_v14 = vld [vmem:[%s6058_s1 + $0x264] ss:$16 sps:$4 sm:$0xff]   ;;  %v4270_v15 = vld [vmem:[%s6058_s1 + $0x26c] ss:$16 sps:$4 sm:$0xff]  }
  0x21   : > { %v4265_v16 = vld [vmem:[%s6058_s1 + $0x260] ss:$16 sps:$4 sm:$0xff]   ;;  %v4268_v17 = vld [vmem:[%s6058_s1 + $0x268] ss:$16 sps:$4 sm:$0xff]   ;;  %v4273_v18 = vld [vmem:[%s6058_s1 + $0x284] ss:$16 sps:$4 sm:$0xff]  }
  0x22   : > { %v4276_v19 = vld [vmem:[%s6058_s1 + $0x28c] ss:$16 sps:$4 sm:$0xff]   ;;  %v4271_v20 = vld [vmem:[%s6058_s1 + $0x280] ss:$16 sps:$4 sm:$0xff]   ;;  %v4274_v21 = vld [vmem:[%s6058_s1 + $0x288] ss:$16 sps:$4 sm:$0xff]  }
  0x23   : > { %1592 = vmatpush1.bf16.msra.mxu0 %v4194_v30  ;;  %1804 = vmatpush1.bf16.msra.mxu1 %v4195_v31  ;;  %v4279_v22 = vld [vmem:[%s6058_s1 + $0x2a4] ss:$16 sps:$4 sm:$0xff]   ;;  %v4282_v23 = vld [vmem:[%s6058_s1 + $0x2ac] ss:$16 sps:$4 sm:$0xff]   ;;  %v4277_v25 = vld [vmem:[%s6058_s1 + $0x2a0] ss:$16 sps:$4 sm:$0xff]  }
  0x24   : > { %1593 = vmatprep.subr.bf16.mxu0 %v4196_v32  ;;  %1805 = vmatprep.subr.bf16.mxu1 %v4198_v33  ;;  %v4331_v24 = vld [vmem:[%s5014_s12 + $0x3c] ss:$28 sps:$4 sm:$0xff]   ;;  %v4285_v27 = vld [vmem:[%s6058_s1 + $0x2c4] ss:$16 sps:$4 sm:$0xff]   ;;  %v4283_v30 = vld [vmem:[%s6058_s1 + $0x2c0] ss:$16 sps:$4 sm:$0xff]  }
  0x25   : > { %v4280_v26 = vld [vmem:[%s6058_s1 + $0x2a8] ss:$16 sps:$4 sm:$0xff]   ;;  %v4288_v28 = vld [vmem:[%s6058_s1 + $0x2cc] ss:$16 sps:$4 sm:$0xff]   ;;  %v4291_v32 = vld [vmem:[%s6058_s1 + $0x2e4] ss:$16 sps:$4 sm:$0xff]  }
  0x26   : > { %v4339_v29 = vld [vmem:[%s5014_s12 + $0x38] ss:$28 sps:$4 sm:$0xff]   ;;  %v4294_v33 = vld [vmem:[%s6058_s1 + $0x2ec] ss:$16 sps:$4 sm:$0xff]  }
  0x27   : > { %1594 = vmatpush1.bf16.msra.mxu0 %v4200_v34  ;;  %1806 = vmatpush1.bf16.msra.mxu1 %v4201_v35  ;;  %v4286_v31 = vld [vmem:[%s6058_s1 + $0x2c8] ss:$16 sps:$4 sm:$0xff]   ;;  %v4289_v35 = vld [vmem:[%s6058_s1 + $0x2e0] ss:$16 sps:$4 sm:$0xff]  }
  0x28   : > { %1595 = vmatprep.subr.bf16.mxu0 %v4202_v36  ;;  %1807 = vmatprep.subr.bf16.mxu1 %v4204_v37  ;;  %v4348_v34 = vld [vmem:[%s5014_s12 + $0xc] ss:$28 sps:$4 sm:$0xff]   ;;  %v4297_v37 = vld [vmem:[%s6058_s1 + $0x304] ss:$16 sps:$4 sm:$0xff]  }
  0x29   : > { %v4292_v36 = vld [vmem:[%s6058_s1 + $0x2e8] ss:$16 sps:$4 sm:$0xff]  }
  0x2a   : > { %v4310_v48 = vld [vmem:[%s6058_s1 + $0x348] ss:$16 sps:$4 sm:$0xff]  }
  0x2b   : > { %1596 = vmatpush1.bf16.msra.mxu0 %v4206_v38  ;;  %1808 = vmatpush1.bf16.msra.mxu1 %v4207_v39  ;;  %v4300_v38 = vld [vmem:[%s6058_s1 + $0x30c] ss:$16 sps:$4 sm:$0xff]   ;;  %v4295_v39 = vld [vmem:[%s6058_s1 + $0x300] ss:$16 sps:$4 sm:$0xff]  }
  0x2c   : > { %1597 = vmatprep.subr.bf16.mxu0 %v4208_v40  ;;  %1809 = vmatprep.subr.bf16.mxu1 %v4210_v41  ;;  %v4298_v40 = vld [vmem:[%s6058_s1 + $0x308] ss:$16 sps:$4 sm:$0xff]   ;;  %v4303_v41 = vld [vmem:[%s6058_s1 + $0x324] ss:$16 sps:$4 sm:$0xff]  }
  0x2f   : > { %1598 = vmatpush1.bf16.msra.mxu0 %v4212_v42  ;;  %1810 = vmatpush1.bf16.msra.mxu1 %v4213_v43  ;;  %v4306_v42 = vld [vmem:[%s6058_s1 + $0x32c] ss:$16 sps:$4 sm:$0xff]   ;;  %v4301_v43 = vld [vmem:[%s6058_s1 + $0x320] ss:$16 sps:$4 sm:$0xff]  }
  0x30   : > { %1599 = vmatprep.subr.bf16.mxu0 %v4214_v44  ;;  %1811 = vmatprep.subr.bf16.mxu1 %v4216_v45  ;;  %v4304_v44 = vld [vmem:[%s6058_s1 + $0x328] ss:$16 sps:$4 sm:$0xff]   ;;  %v4309_v45 = vld [vmem:[%s6058_s1 + $0x344] ss:$16 sps:$4 sm:$0xff]  }
  0x33   : > { %1600 = vmatpush1.bf16.msra.mxu0 %v4218_v46  ;;  %1812 = vmatpush1.bf16.msra.mxu1 %v4219_v47  ;;  %v4312_v46 = vld [vmem:[%s6058_s1 + $0x34c] ss:$16 sps:$4 sm:$0xff]   ;;  %v4307_v47 = vld [vmem:[%s6058_s1 + $0x340] ss:$16 sps:$4 sm:$0xff]  }
  0x34   : > { %1601 = vmatprep.subr.bf16.mxu0 %v4220_v49  ;;  %1813 = vmatprep.subr.bf16.mxu1 %v4222_v50  ;;  %v4315_v49 = vld [vmem:[%s6058_s1 + $0x364] ss:$16 sps:$4 sm:$0xff]   ;;  %v4318_v50 = vld [vmem:[%s6058_s1 + $0x36c] ss:$16 sps:$4 sm:$0xff]  }
  0x37   : > { %1602 = vmatpush1.bf16.msra.mxu0 %v4224_v51  ;;  %1814 = vmatpush1.bf16.msra.mxu1 %v4225_v52  ;;  %v4313_v51 = vld [vmem:[%s6058_s1 + $0x360] ss:$16 sps:$4 sm:$0xff]   ;;  %v4316_v52 = vld [vmem:[%s6058_s1 + $0x368] ss:$16 sps:$4 sm:$0xff]  }
  0x38   : > { %1603 = vmatprep.subr.bf16.mxu0 %v4226_v53  ;;  %1815 = vmatprep.subr.bf16.mxu1 %v4228_v54  ;;  %v4321_v53 = vld [vmem:[%s6058_s1 + $0x384] ss:$16 sps:$4 sm:$0xff]   ;;  %v4324_v54 = vld [vmem:[%s6058_s1 + $0x38c] ss:$16 sps:$4 sm:$0xff]  }
  0x3b   : > { %1604 = vmatpush1.bf16.msra.mxu0 %v4230_v55  ;;  %1816 = vmatpush1.bf16.msra.mxu1 %v4231_v56  ;;  %v4319_v55 = vld [vmem:[%s6058_s1 + $0x380] ss:$16 sps:$4 sm:$0xff]   ;;  %v4322_v56 = vld [vmem:[%s6058_s1 + $0x388] ss:$16 sps:$4 sm:$0xff]  }
  0x3c   : > { %1605 = vmatprep.subr.bf16.mxu0 %v4232_v57  ;;  %1817 = vmatprep.subr.bf16.mxu1 %v4234_v58  ;;  %v4327_v57 = vld [vmem:[%s6058_s1 + $0x3a4] ss:$16 sps:$4 sm:$0xff]   ;;  %v4330_v58 = vld [vmem:[%s6058_s1 + $0x3ac] ss:$16 sps:$4 sm:$0xff]  }
  0x3f   : > { %1606 = vmatpush1.bf16.msra.mxu0 %v4236_v59  ;;  %1818 = vmatpush1.bf16.msra.mxu1 %v4237_v60  ;;  %v4325_v59 = vld [vmem:[%s6058_s1 + $0x3a0] ss:$16 sps:$4 sm:$0xff]   ;;  %v4328_v60 = vld [vmem:[%s6058_s1 + $0x3a8] ss:$16 sps:$4 sm:$0xff]  }
  0x40   : > { %1607 = vmatprep.subr.bf16.mxu0 %v4238_v61  ;;  %1819 = vmatprep.subr.bf16.mxu1 %v4240_v62  ;;  %v4335_v61 = vld [vmem:[%s6058_s1 + $0x3c4] ss:$16 sps:$4 sm:$0xff]   ;;  %v4338_v62 = vld [vmem:[%s6058_s1 + $0x3cc] ss:$16 sps:$4 sm:$0xff]  }
  0x43   : > { %1608 = vmatpush1.bf16.msra.mxu0 %v4242_v63  ;;  %1820 = vmatpush1.bf16.msra.mxu1 %v4243_v0  ;;  %v4333_v63 = vld [vmem:[%s6058_s1 + $0x3c0] ss:$16 sps:$4 sm:$0xff]   ;;  %v4336_v0 = vld [vmem:[%s6058_s1 + $0x3c8] ss:$16 sps:$4 sm:$0xff]  }
  0x44   : > { %1630 = vmatprep.subr.bf16.mxu0 %v4249_v1  ;;  %1842 = vmatprep.subr.bf16.mxu1 %v4252_v2  ;;  %v4342_v1 = vld [vmem:[%s6058_s1 + $0x3e4] ss:$16 sps:$4 sm:$0xff]   ;;  %v4345_v2 = vld [vmem:[%s6058_s1 + $0x3ec] ss:$16 sps:$4 sm:$0xff]  }
  0x46   : > { %1610 = vmatmul.mubr.bf16.vlgmr.msra.gmra.mrb[0].mxu0 %v4244_v3  ;;  %1822 = vmatmul.mubr.bf16.vlgmr.msra.gmra.mrb[0].mxu1 %v4244_v3  ;;  %v4340_v3 = vld [vmem:[%s6058_s1 + $0x3e0] ss:$16 sps:$4 sm:$0xff]  }
  0x47   : > { %1631 = vmatpush1.bf16.msra.mxu0 %v4247_v4  ;;  %1843 = vmatpush1.bf16.msra.mxu1 %v4250_v5  ;;  %v4343_v4 = vld [vmem:[%s6058_s1 + $0x3e8] ss:$16 sps:$4 sm:$0xff]   ;;  %v4351_v5 = vld [vmem:[%s6058_s1 + $0x404] ss:$16 sps:$4 sm:$0xff]  }
  0x48   : > { %1632 = vmatprep.subr.bf16.mxu0 %v4255_v6  ;;  %1844 = vmatprep.subr.bf16.mxu1 %v4258_v7  ;;  %v4354_v6 = vld [vmem:[%s6058_s1 + $0x40c] ss:$16 sps:$4 sm:$0xff]   ;;  %v4346_v7 = vld [vmem:[%s5014_s12 + $0x8] ss:$28 sps:$4 sm:$0xff]  }
  0x49   : > { %1619 = vmatprep.mubr.bf16.mxu0 %v4331_v24  ;;  %1831 = vmatprep.mubr.bf16.mxu1 %v4331_v24  ;;  %v4370_v24 = vld [vmem:[%s6058_s1 + $0x468] ss:$16 sps:$4 sm:$0xff]  }
  0x4b   : > { %1633 = vmatpush1.bf16.msra.mxu0 %v4253_v8  ;;  %1845 = vmatpush1.bf16.msra.mxu1 %v4256_v9  ;;  %v4349_v8 = vld [vmem:[%s6058_s1 + $0x400] ss:$16 sps:$4 sm:$0xff]   ;;  %v4352_v9 = vld [vmem:[%s6058_s1 + $0x408] ss:$16 sps:$4 sm:$0xff]  }
  0x4c   : > { %1634 = vmatprep.subr.bf16.mxu0 %v4261_v10  ;;  %1846 = vmatprep.subr.bf16.mxu1 %v4264_v11  ;;  %v4357_v10 = vld [vmem:[%s6058_s1 + $0x424] ss:$16 sps:$4 sm:$0xff]   ;;  %v4360_v11 = vld [vmem:[%s6058_s1 + $0x42c] ss:$16 sps:$4 sm:$0xff]  }
  0x4e   : > { %1620 = vmatmul.mubr.bf16.gmra.mrb[4].mxu0 %v4339_v29  ;;  %1832 = vmatmul.mubr.bf16.gmra.mrb[4].mxu1 %v4339_v29  ;;  %v4381_v29 = vld [vmem:[%s6058_s1 + $0x4a4] ss:$16 sps:$4 sm:$0xff]  }
  0x4f   : > { %1635 = vmatpush1.bf16.msra.mxu0 %v4259_v12  ;;  %1847 = vmatpush1.bf16.msra.mxu1 %v4262_v13  ;;  %v4433_v12 = vld [vmem:[%s5014_s12 + $0x44] ss:$28 sps:$4 sm:$0xff]  }
  0x50   : > { %1636 = vmatprep.subr.bf16.mxu0 %v4267_v14  ;;  %1848 = vmatprep.subr.bf16.mxu1 %v4270_v15  ;;  %v4355_v13 = vld [vmem:[%s6058_s1 + $0x420] ss:$16 sps:$4 sm:$0xff]   ;;  %v4358_v14 = vld [vmem:[%s6058_s1 + $0x428] ss:$16 sps:$4 sm:$0xff]   ;;  %v4363_v15 = vld [vmem:[%s6058_s1 + $0x444] ss:$16 sps:$4 sm:$0xff]  }
  0x51   : > { %1662 = vmatprep.mubr.bf16.mxu0 %v4348_v34  ;;  %1874 = vmatprep.mubr.bf16.mxu1 %v4348_v34  ;;  %v4390_v34 = vld [vmem:[%s6058_s1 + $0x4cc] ss:$16 sps:$4 sm:$0xff]  }
  0x53   : > { %1637 = vmatpush1.bf16.msra.mxu0 %v4265_v16  ;;  %1849 = vmatpush1.bf16.msra.mxu1 %v4268_v17  ;;  %v4366_v16 = vld [vmem:[%s6058_s1 + $0x44c] ss:$16 sps:$4 sm:$0xff]   ;;  %v4361_v17 = vld [vmem:[%s6058_s1 + $0x440] ss:$16 sps:$4 sm:$0xff]  }
  0x54   : > { %1638 = vmatprep.subr.bf16.mxu0 %v4273_v18  ;;  %1850 = vmatprep.subr.bf16.mxu1 %v4276_v19  ;;  %v4364_v18 = vld [vmem:[%s6058_s1 + $0x448] ss:$16 sps:$4 sm:$0xff]   ;;  %v4435_v19 = vld [vmem:[%s5014_s12 + $0x40] ss:$28 sps:$4 sm:$0xff]  }
  0x57   : > { %1639 = vmatpush1.bf16.msra.mxu0 %v4271_v20  ;;  %1851 = vmatpush1.bf16.msra.mxu1 %v4274_v21  ;;  %v4369_v20 = vld [vmem:[%s6058_s1 + $0x464] ss:$16 sps:$4 sm:$0xff]   ;;  %v4372_v21 = vld [vmem:[%s6058_s1 + $0x46c] ss:$16 sps:$4 sm:$0xff]  }
  0x58   : > { %1640 = vmatprep.subr.bf16.mxu0 %v4279_v22  ;;  %1852 = vmatprep.subr.bf16.mxu1 %v4282_v23  ;;  %v4450_v22 = vld [vmem:[%s5014_s12 + $0x14] ss:$28 sps:$4 sm:$0xff]  }
  0x59   : > { %v4367_v23 = vld [vmem:[%s6058_s1 + $0x460] ss:$16 sps:$4 sm:$0xff]  }
  0x5b   : > { %1641 = vmatpush1.bf16.msra.mxu0 %v4277_v25  ;;  %1853 = vmatpush1.bf16.msra.mxu1 %v4280_v26  ;;  %v4375_v25 = vld [vmem:[%s6058_s1 + $0x484] ss:$16 sps:$4 sm:$0xff]   ;;  %v4378_v26 = vld [vmem:[%s6058_s1 + $0x48c] ss:$16 sps:$4 sm:$0xff]  }
  0x5c   : > { %1642 = vmatprep.subr.bf16.mxu0 %v4285_v27  ;;  %1854 = vmatprep.subr.bf16.mxu1 %v4288_v28  ;;  %v4373_v27 = vld [vmem:[%s6058_s1 + $0x480] ss:$16 sps:$4 sm:$0xff]   ;;  %v4376_v28 = vld [vmem:[%s6058_s1 + $0x488] ss:$16 sps:$4 sm:$0xff]  }
  0x5f   : > { %1643 = vmatpush1.bf16.msra.mxu0 %v4283_v30  ;;  %1855 = vmatpush1.bf16.msra.mxu1 %v4286_v31  ;;  %v4384_v30 = vld [vmem:[%s6058_s1 + $0x4ac] ss:$16 sps:$4 sm:$0xff]   ;;  %v4379_v31 = vld [vmem:[%s6058_s1 + $0x4a0] ss:$16 sps:$4 sm:$0xff]  }
  0x60   : > { %1644 = vmatprep.subr.bf16.mxu0 %v4291_v32  ;;  %1856 = vmatprep.subr.bf16.mxu1 %v4294_v33  ;;  %v4382_v32 = vld [vmem:[%s6058_s1 + $0x4a8] ss:$16 sps:$4 sm:$0xff]   ;;  %v4387_v33 = vld [vmem:[%s6058_s1 + $0x4c4] ss:$16 sps:$4 sm:$0xff]  }
  0x63   : > { %1645 = vmatpush1.bf16.msra.mxu0 %v4289_v35  ;;  %1857 = vmatpush1.bf16.msra.mxu1 %v4292_v36  ;;  %v4385_v35 = vld [vmem:[%s6058_s1 + $0x4c0] ss:$16 sps:$4 sm:$0xff]   ;;  %v4388_v36 = vld [vmem:[%s6058_s1 + $0x4c8] ss:$16 sps:$4 sm:$0xff]  }
  0x64   : > { %1646 = vmatprep.subr.bf16.mxu0 %v4297_v37  ;;  %1858 = vmatprep.subr.bf16.mxu1 %v4300_v38  ;;  %v4393_v37 = vld [vmem:[%s6058_s1 + $0x4e4] ss:$16 sps:$4 sm:$0xff]   ;;  %v4396_v38 = vld [vmem:[%s6058_s1 + $0x4ec] ss:$16 sps:$4 sm:$0xff]  }
  0x67   : > { %1647 = vmatpush1.bf16.msra.mxu0 %v4295_v39  ;;  %1859 = vmatpush1.bf16.msra.mxu1 %v4298_v40  ;;  %v4391_v39 = vld [vmem:[%s6058_s1 + $0x4e0] ss:$16 sps:$4 sm:$0xff]   ;;  %v4394_v40 = vld [vmem:[%s6058_s1 + $0x4e8] ss:$16 sps:$4 sm:$0xff]  }
  0x68   : > { %1648 = vmatprep.subr.bf16.mxu0 %v4303_v41  ;;  %1860 = vmatprep.subr.bf16.mxu1 %v4306_v42  ;;  %v4399_v41 = vld [vmem:[%s6058_s1 + $0x504] ss:$16 sps:$4 sm:$0xff]   ;;  %v4402_v42 = vld [vmem:[%s6058_s1 + $0x50c] ss:$16 sps:$4 sm:$0xff]  }
  0x6b   : > { %1649 = vmatpush1.bf16.msra.mxu0 %v4301_v43  ;;  %1861 = vmatpush1.bf16.msra.mxu1 %v4304_v44  ;;  %v4397_v43 = vld [vmem:[%s6058_s1 + $0x500] ss:$16 sps:$4 sm:$0xff]   ;;  %v4400_v44 = vld [vmem:[%s6058_s1 + $0x508] ss:$16 sps:$4 sm:$0xff]  }
  0x6c   : > { %1650 = vmatprep.subr.bf16.mxu0 %v4309_v45  ;;  %1862 = vmatprep.subr.bf16.mxu1 %v4312_v46  ;;  %v4405_v45 = vld [vmem:[%s6058_s1 + $0x524] ss:$16 sps:$4 sm:$0xff]   ;;  %v4408_v46 = vld [vmem:[%s6058_s1 + $0x52c] ss:$16 sps:$4 sm:$0xff]  }
  0x6f   : > { %1651 = vmatpush1.bf16.msra.mxu0 %v4307_v47  ;;  %1863 = vmatpush1.bf16.msra.mxu1 %v4310_v48  ;;  %v4403_v47 = vld [vmem:[%s6058_s1 + $0x520] ss:$16 sps:$4 sm:$0xff]   ;;  %v4406_v48 = vld [vmem:[%s6058_s1 + $0x528] ss:$16 sps:$4 sm:$0xff]  }
  0x70   : > { %1652 = vmatprep.subr.bf16.mxu0 %v4315_v49  ;;  %1864 = vmatprep.subr.bf16.mxu1 %v4318_v50  ;;  %v4411_v49 = vld [vmem:[%s6058_s1 + $0x544] ss:$16 sps:$4 sm:$0xff]   ;;  %v4414_v50 = vld [vmem:[%s6058_s1 + $0x54c] ss:$16 sps:$4 sm:$0xff]  }
  0x73   : > { %1653 = vmatpush1.bf16.msra.mxu0 %v4313_v51  ;;  %1865 = vmatpush1.bf16.msra.mxu1 %v4316_v52  ;;  %v4409_v51 = vld [vmem:[%s6058_s1 + $0x540] ss:$16 sps:$4 sm:$0xff]   ;;  %v4412_v52 = vld [vmem:[%s6058_s1 + $0x548] ss:$16 sps:$4 sm:$0xff]  }
  0x74   : > { %1654 = vmatprep.subr.bf16.mxu0 %v4321_v53  ;;  %1866 = vmatprep.subr.bf16.mxu1 %v4324_v54  ;;  %v4417_v53 = vld [vmem:[%s6058_s1 + $0x564] ss:$16 sps:$4 sm:$0xff]   ;;  %v4420_v54 = vld [vmem:[%s6058_s1 + $0x56c] ss:$16 sps:$4 sm:$0xff]  }
  0x77   : > { %1655 = vmatpush1.bf16.msra.mxu0 %v4319_v55  ;;  %1867 = vmatpush1.bf16.msra.mxu1 %v4322_v56  ;;  %v4415_v55 = vld [vmem:[%s6058_s1 + $0x560] ss:$16 sps:$4 sm:$0xff]   ;;  %v4418_v56 = vld [vmem:[%s6058_s1 + $0x568] ss:$16 sps:$4 sm:$0xff]  }
  0x78   : > { %1656 = vmatprep.subr.bf16.mxu0 %v4327_v57  ;;  %1868 = vmatprep.subr.bf16.mxu1 %v4330_v58  ;;  %v4423_v57 = vld [vmem:[%s6058_s1 + $0x584] ss:$16 sps:$4 sm:$0xff]   ;;  %v4426_v58 = vld [vmem:[%s6058_s1 + $0x58c] ss:$16 sps:$4 sm:$0xff]  }
  0x7b   : > { %1657 = vmatpush1.bf16.msra.mxu0 %v4325_v59  ;;  %1869 = vmatpush1.bf16.msra.mxu1 %v4328_v60  ;;  %v4421_v59 = vld [vmem:[%s6058_s1 + $0x580] ss:$16 sps:$4 sm:$0xff]   ;;  %v4424_v60 = vld [vmem:[%s6058_s1 + $0x588] ss:$16 sps:$4 sm:$0xff]  }
  0x7c   : > { %1658 = vmatprep.subr.bf16.mxu0 %v4335_v61  ;;  %1870 = vmatprep.subr.bf16.mxu1 %v4338_v62  ;;  %v4429_v61 = vld [vmem:[%s6058_s1 + $0x5a4] ss:$16 sps:$4 sm:$0xff]   ;;  %v4432_v62 = vld [vmem:[%s6058_s1 + $0x5ac] ss:$16 sps:$4 sm:$0xff]  }
  0x7f   : > { %1659 = vmatpush1.bf16.msra.mxu0 %v4333_v63  ;;  %1871 = vmatpush1.bf16.msra.mxu1 %v4336_v0  ;;  %v4427_v63 = vld [vmem:[%s6058_s1 + $0x5a0] ss:$16 sps:$4 sm:$0xff]   ;;  %v4430_v0 = vld [vmem:[%s6058_s1 + $0x5a8] ss:$16 sps:$4 sm:$0xff]  }
  0x80   : > { %1660 = vmatprep.subr.bf16.mxu0 %v4342_v1  ;;  %1872 = vmatprep.subr.bf16.mxu1 %v4345_v2  ;;  %v4438_v1 = vld [vmem:[%s6058_s1 + $0x5c4] ss:$16 sps:$4 sm:$0xff]   ;;  %v4441_v2 = vld [vmem:[%s6058_s1 + $0x5cc] ss:$16 sps:$4 sm:$0xff]  }
  0x83   : > { %1661 = vmatpush1.bf16.msra.mxu0 %v4340_v3  ;;  %1873 = vmatpush1.bf16.msra.mxu1 %v4343_v4  ;;  %v4436_v3 = vld [vmem:[%s6058_s1 + $0x5c0] ss:$16 sps:$4 sm:$0xff]   ;;  %v4439_v4 = vld [vmem:[%s6058_s1 + $0x5c8] ss:$16 sps:$4 sm:$0xff]  }
  0x84   : > { %1683 = vmatprep.subr.bf16.mxu0 %v4351_v5  ;;  %1895 = vmatprep.subr.bf16.mxu1 %v4354_v6  ;;  %v4444_v5 = vld [vmem:[%s6058_s1 + $0x5e4] ss:$16 sps:$4 sm:$0xff]   ;;  %v4447_v6 = vld [vmem:[%s6058_s1 + $0x5ec] ss:$16 sps:$4 sm:$0xff]  }
  0x86   : > { %1663 = vmatmul.mubr.bf16.vlgmr.msra.gmra.mrb[0].mxu0 %v4346_v7  ;;  %1875 = vmatmul.mubr.bf16.vlgmr.msra.gmra.mrb[0].mxu1 %v4346_v7  ;;  %v4442_v7 = vld [vmem:[%s6058_s1 + $0x5e0] ss:$16 sps:$4 sm:$0xff]  }
  0x87   : > { %1684 = vmatpush1.bf16.msra.mxu0 %v4349_v8  ;;  %1896 = vmatpush1.bf16.msra.mxu1 %v4352_v9  ;;  %v4445_v8 = vld [vmem:[%s6058_s1 + $0x5e8] ss:$16 sps:$4 sm:$0xff]   ;;  %v4453_v9 = vld [vmem:[%s6058_s1 + $0x604] ss:$16 sps:$4 sm:$0xff]  }
  0x88   : > { %1685 = vmatprep.subr.bf16.mxu0 %v4357_v10  ;;  %1897 = vmatprep.subr.bf16.mxu1 %v4360_v11  ;;  %v4459_v10 = vld [vmem:[%s6058_s1 + $0x60c] ss:$16 sps:$4 sm:$0xff]  }
  0x89   : > { %1672 = vmatprep.mubr.bf16.mxu0 %v4433_v12  ;;  %1884 = vmatprep.mubr.bf16.mxu1 %v4433_v12  ;;  %v4448_v11 = vld [vmem:[%s5014_s12 + $0x10] ss:$28 sps:$4 sm:$0xff]  }
  0x8a   : > { %v4451_v12 = vld [vmem:[%s6058_s1 + $0x600] ss:$16 sps:$4 sm:$0xff]  }
  0x8b   : > { %1686 = vmatpush1.bf16.msra.mxu0 %v4355_v13  ;;  %1898 = vmatpush1.bf16.msra.mxu1 %v4358_v14  ;;  %v4454_v13 = vld [vmem:[%s5014_s12 + $0x4c] ss:$28 sps:$4 sm:$0xff]  }
  0x8c   : > { %1687 = vmatprep.subr.bf16.mxu0 %v4363_v15  ;;  %1899 = vmatprep.subr.bf16.mxu1 %v4366_v16  ;;  %v4457_v14 = vld [vmem:[%s6058_s1 + $0x608] ss:$16 sps:$4 sm:$0xff]   ;;  %v4464_v15 = vld [vmem:[%s6060_s3 + $0x4] ss:$16 sps:$4 sm:$0xff]   ;;  %v4467_v16 = vld [vmem:[%s6060_s3 + $0xc] ss:$16 sps:$4 sm:$0xff]  }
  0x8e   : > { %1673 = vmatmul.mubr.bf16.gmra.mrb[4].mxu0 %v4435_v19  ;;  %1885 = vmatmul.mubr.bf16.gmra.mrb[4].mxu1 %v4435_v19  ;;  %v4460_v19 = vld [vmem:[%s5014_s12 + $0x18] ss:$28 sps:$4 sm:$0xff]  }
  0x8f   : > { %1688 = vmatpush1.bf16.msra.mxu0 %v4361_v17  ;;  %1900 = vmatpush1.bf16.msra.mxu1 %v4364_v18  ;;  %v4456_v17 = vld [vmem:[%s5014_s12 + $0x48] ss:$28 sps:$4 sm:$0xff]   ;;  %v4822_v18 = vmov 0  }
  0x90   : > { %1689 = vmatprep.subr.bf16.mxu0 %v4369_v20  ;;  %1901 = vmatprep.subr.bf16.mxu1 %v4372_v21  ;;  %v4462_v20 = vld [vmem:[%s6060_s3] ss:$16 sps:$4 sm:$0xff]   ;;  %v4465_v21 = vld [vmem:[%s6060_s3 + $0x8] ss:$16 sps:$4 sm:$0xff]  }
  0x91   : > { %1715 = vmatprep.mubr.bf16.mxu0 %v4450_v22  ;;  %1927 = vmatprep.mubr.bf16.mxu1 %v4450_v22  ;;  %v4470_v22 = vld [vmem:[%s6060_s3 + $0x24] ss:$16 sps:$4 sm:$0xff]  }
  0x93   : > { %1690 = vmatpush1.bf16.msra.mxu0 %v4367_v23  ;;  %1902 = vmatpush1.bf16.msra.mxu1 %v4370_v24  ;;  %v4473_v23 = vld [vmem:[%s6060_s3 + $0x2c] ss:$16 sps:$4 sm:$0xff]   ;;  %v4468_v24 = vld [vmem:[%s6060_s3 + $0x20] ss:$16 sps:$4 sm:$0xff]  }
  0x94   : > { %1691 = vmatprep.subr.bf16.mxu0 %v4375_v25  ;;  %1903 = vmatprep.subr.bf16.mxu1 %v4378_v26  ;;  %v4471_v25 = vld [vmem:[%s6060_s3 + $0x28] ss:$16 sps:$4 sm:$0xff]   ;;  %v4476_v26 = vld [vmem:[%s6060_s3 + $0x44] ss:$16 sps:$4 sm:$0xff]  }
  0x97   : > { %1692 = vmatpush1.bf16.msra.mxu0 %v4373_v27  ;;  %1904 = vmatpush1.bf16.msra.mxu1 %v4376_v28  ;;  %v4479_v27 = vld [vmem:[%s6060_s3 + $0x4c] ss:$16 sps:$4 sm:$0xff]  }
  0x98   : > { %1693 = vmatprep.subr.bf16.mxu0 %v4381_v29  ;;  %1905 = vmatprep.subr.bf16.mxu1 %v4384_v30  ;;  %v4461_v28 = vld [vmem:[%s5014_s12 + $0x50] ss:$28 sps:$4 sm:$0xff]   ;;  %v4477_v30 = vld [vmem:[%s6060_s3 + $0x48] ss:$16 sps:$4 sm:$0xff]  }
  0x99   : > { %v4474_v29 = vld [vmem:[%s6060_s3 + $0x40] ss:$16 sps:$4 sm:$0xff]  }
  0x9b   : > { %1694 = vmatpush1.bf16.msra.mxu0 %v4379_v31  ;;  %1906 = vmatpush1.bf16.msra.mxu1 %v4382_v32  ;;  %v4482_v31 = vld [vmem:[%s6060_s3 + $0x64] ss:$16 sps:$4 sm:$0xff]   ;;  %v4485_v32 = vld [vmem:[%s6060_s3 + $0x6c] ss:$16 sps:$4 sm:$0xff]  }
  0x9c   : > { %1695 = vmatprep.subr.bf16.mxu0 %v4387_v33  ;;  %1907 = vmatprep.subr.bf16.mxu1 %v4390_v34  ;;  %v4480_v33 = vld [vmem:[%s6060_s3 + $0x60] ss:$16 sps:$4 sm:$0xff]   ;;  %v4483_v34 = vld [vmem:[%s6060_s3 + $0x68] ss:$16 sps:$4 sm:$0xff]  }
  0x9f   : > { %1696 = vmatpush1.bf16.msra.mxu0 %v4385_v35  ;;  %1908 = vmatpush1.bf16.msra.mxu1 %v4388_v36  ;;  %v4488_v35 = vld [vmem:[%s6060_s3 + $0x84] ss:$16 sps:$4 sm:$0xff]   ;;  %v4491_v36 = vld [vmem:[%s6060_s3 + $0x8c] ss:$16 sps:$4 sm:$0xff]  }
  0xa0   : > { %1697 = vmatprep.subr.bf16.mxu0 %v4393_v37  ;;  %1909 = vmatprep.subr.bf16.mxu1 %v4396_v38  ;;  %v4486_v37 = vld [vmem:[%s6060_s3 + $0x80] ss:$16 sps:$4 sm:$0xff]   ;;  %v4489_v38 = vld [vmem:[%s6060_s3 + $0x88] ss:$16 sps:$4 sm:$0xff]  }
  0xa3   : > { %1698 = vmatpush1.bf16.msra.mxu0 %v4391_v39  ;;  %1910 = vmatpush1.bf16.msra.mxu1 %v4394_v40  ;;  %v4494_v39 = vld [vmem:[%s6060_s3 + $0xa4] ss:$16 sps:$4 sm:$0xff]   ;;  %v4497_v40 = vld [vmem:[%s6060_s3 + $0xac] ss:$16 sps:$4 sm:$0xff]  }
  0xa4   : > { %1699 = vmatprep.subr.bf16.mxu0 %v4399_v41  ;;  %1911 = vmatprep.subr.bf16.mxu1 %v4402_v42  ;;  %v4492_v41 = vld [vmem:[%s6060_s3 + $0xa0] ss:$16 sps:$4 sm:$0xff]   ;;  %v4495_v42 = vld [vmem:[%s6060_s3 + $0xa8] ss:$16 sps:$4 sm:$0xff]  }
  0xa7   : > { %1700 = vmatpush1.bf16.msra.mxu0 %v4397_v43  ;;  %1912 = vmatpush1.bf16.msra.mxu1 %v4400_v44  ;;  %v4500_v43 = vld [vmem:[%s6060_s3 + $0xc4] ss:$16 sps:$4 sm:$0xff]   ;;  %v4503_v44 = vld [vmem:[%s6060_s3 + $0xcc] ss:$16 sps:$4 sm:$0xff]  }
  0xa8   : > { %1701 = vmatprep.subr.bf16.mxu0 %v4405_v45  ;;  %1913 = vmatprep.subr.bf16.mxu1 %v4408_v46  ;;  %v4498_v45 = vld [vmem:[%s6060_s3 + $0xc0] ss:$16 sps:$4 sm:$0xff]   ;;  %v4501_v46 = vld [vmem:[%s6060_s3 + $0xc8] ss:$16 sps:$4 sm:$0xff]  }
  0xab   : > { %1702 = vmatpush1.bf16.msra.mxu0 %v4403_v47  ;;  %1914 = vmatpush1.bf16.msra.mxu1 %v4406_v48  ;;  %v4506_v47 = vld [vmem:[%s6060_s3 + $0xe4] ss:$16 sps:$4 sm:$0xff]   ;;  %v4509_v48 = vld [vmem:[%s6060_s3 + $0xec] ss:$16 sps:$4 sm:$0xff]  }
  0xac   : > { %1703 = vmatprep.subr.bf16.mxu0 %v4411_v49  ;;  %1915 = vmatprep.subr.bf16.mxu1 %v4414_v50  ;;  %v4504_v49 = vld [vmem:[%s6060_s3 + $0xe0] ss:$16 sps:$4 sm:$0xff]   ;;  %v4507_v50 = vld [vmem:[%s6060_s3 + $0xe8] ss:$16 sps:$4 sm:$0xff]  }
  0xaf   : > { %1704 = vmatpush1.bf16.msra.mxu0 %v4409_v51  ;;  %1916 = vmatpush1.bf16.msra.mxu1 %v4412_v52  ;;  %v4512_v51 = vld [vmem:[%s6060_s3 + $0x104] ss:$16 sps:$4 sm:$0xff]   ;;  %v4515_v52 = vld [vmem:[%s6060_s3 + $0x10c] ss:$16 sps:$4 sm:$0xff]  }
  0xb0   : > { %1705 = vmatprep.subr.bf16.mxu0 %v4417_v53  ;;  %1917 = vmatprep.subr.bf16.mxu1 %v4420_v54  ;;  %v4510_v53 = vld [vmem:[%s6060_s3 + $0x100] ss:$16 sps:$4 sm:$0xff]   ;;  %v4513_v54 = vld [vmem:[%s6060_s3 + $0x108] ss:$16 sps:$4 sm:$0xff]  }
  0xb3   : > { %1706 = vmatpush1.bf16.msra.mxu0 %v4415_v55  ;;  %1918 = vmatpush1.bf16.msra.mxu1 %v4418_v56  ;;  %v4518_v55 = vld [vmem:[%s6060_s3 + $0x124] ss:$16 sps:$4 sm:$0xff]   ;;  %v4521_v56 = vld [vmem:[%s6060_s3 + $0x12c] ss:$16 sps:$4 sm:$0xff]  }
  0xb4   : > { %1707 = vmatprep.subr.bf16.mxu0 %v4423_v57  ;;  %1919 = vmatprep.subr.bf16.mxu1 %v4426_v58  ;;  %v4516_v57 = vld [vmem:[%s6060_s3 + $0x120] ss:$16 sps:$4 sm:$0xff]   ;;  %v4519_v58 = vld [vmem:[%s6060_s3 + $0x128] ss:$16 sps:$4 sm:$0xff]  }
  0xb7   : > { %1708 = vmatpush1.bf16.msra.mxu0 %v4421_v59  ;;  %1920 = vmatpush1.bf16.msra.mxu1 %v4424_v60  ;;  %v4524_v59 = vld [vmem:[%s6060_s3 + $0x144] ss:$16 sps:$4 sm:$0xff]   ;;  %v4527_v60 = vld [vmem:[%s6060_s3 + $0x14c] ss:$16 sps:$4 sm:$0xff]  }
  0xb8   : > { %1709 = vmatprep.subr.bf16.mxu0 %v4429_v61  ;;  %1921 = vmatprep.subr.bf16.mxu1 %v4432_v62  ;;  %v4522_v61 = vld [vmem:[%s6060_s3 + $0x140] ss:$16 sps:$4 sm:$0xff]   ;;  %v4525_v62 = vld [vmem:[%s6060_s3 + $0x148] ss:$16 sps:$4 sm:$0xff]  }
  0xbb   : > { %1710 = vmatpush1.bf16.msra.mxu0 %v4427_v63  ;;  %1922 = vmatpush1.bf16.msra.mxu1 %v4430_v0  ;;  %v4530_v63 = vld [vmem:[%s6060_s3 + $0x164] ss:$16 sps:$4 sm:$0xff]   ;;  %v4533_v0 = vld [vmem:[%s6060_s3 + $0x16c] ss:$16 sps:$4 sm:$0xff]  }
  0xbc   : > { %1711 = vmatprep.subr.bf16.mxu0 %v4438_v1  ;;  %1923 = vmatprep.subr.bf16.mxu1 %v4441_v2  ;;  %v4528_v1 = vld [vmem:[%s6060_s3 + $0x160] ss:$16 sps:$4 sm:$0xff]   ;;  %v4531_v2 = vld [vmem:[%s6060_s3 + $0x168] ss:$16 sps:$4 sm:$0xff]  }
  0xbf   : > { %1712 = vmatpush1.bf16.msra.mxu0 %v4436_v3  ;;  %1924 = vmatpush1.bf16.msra.mxu1 %v4439_v4  ;;  %v4536_v3 = vld [vmem:[%s6060_s3 + $0x184] ss:$16 sps:$4 sm:$0xff]   ;;  %v4539_v4 = vld [vmem:[%s6060_s3 + $0x18c] ss:$16 sps:$4 sm:$0xff]  }
  0xc0   : > { %1713 = vmatprep.subr.bf16.mxu0 %v4444_v5  ;;  %1925 = vmatprep.subr.bf16.mxu1 %v4447_v6  ;;  %v4534_v5 = vld [vmem:[%s6060_s3 + $0x180] ss:$16 sps:$4 sm:$0xff]   ;;  %v4537_v6 = vld [vmem:[%s6060_s3 + $0x188] ss:$16 sps:$4 sm:$0xff]  }
  0xc3   : > { %1714 = vmatpush1.bf16.msra.mxu0 %v4442_v7  ;;  %1926 = vmatpush1.bf16.msra.mxu1 %v4445_v8  ;;  %v4542_v7 = vld [vmem:[%s6060_s3 + $0x1a4] ss:$16 sps:$4 sm:$0xff]   ;;  %v4545_v8 = vld [vmem:[%s6060_s3 + $0x1ac] ss:$16 sps:$4 sm:$0xff]  }
  0xc4   : > { %1736 = vmatprep.subr.bf16.mxu0 %v4453_v9  ;;  %1948 = vmatprep.subr.bf16.mxu1 %v4459_v10  ;;  %v4540_v9 = vld [vmem:[%s6060_s3 + $0x1a0] ss:$16 sps:$4 sm:$0xff]   ;;  %v4543_v10 = vld [vmem:[%s6060_s3 + $0x1a8] ss:$16 sps:$4 sm:$0xff]  }
  0xc6   : > { %1716 = vmatmul.mubr.bf16.vlgmr.msra.gmra.mrb[0].mxu0 %v4448_v11  ;;  %1928 = vmatmul.mubr.bf16.vlgmr.msra.gmra.mrb[0].mxu1 %v4448_v11  ;;  %v4548_v11 = vld [vmem:[%s6060_s3 + $0x1c4] ss:$16 sps:$4 sm:$0xff]  }
  0xc7   : > { %1737 = vmatpush1.bf16.msra.mxu0 %v4451_v12  ;;  %1725 = vmatprep.mubr.bf16.mxu0 %v4454_v13  ;;  %v4551_v12 = vld [vmem:[%s6060_s3 + $0x1cc] ss:$16 sps:$4 sm:$0xff]  }
  0xc8   : > { %1937 = vmatprep.mubr.bf16.mxu1 %v4454_v13  ;;  %1949 = vmatpush1.bf16.msra.mxu1 %v4457_v14  ;;  %v4546_v13 = vld [vmem:[%s6060_s3 + $0x1c0] ss:$16 sps:$4 sm:$0xff]   ;;  %v4549_v14 = vld [vmem:[%s6060_s3 + $0x1c8] ss:$16 sps:$4 sm:$0xff]  }
  0xc9   : > { %2879 = vmatprep.subr.bf16.mxu0 %v4464_v15  ;;  %2985 = vmatprep.subr.bf16.mxu1 %v4467_v16  ;;  %v4554_v15 = vld [vmem:[%s6060_s3 + $0x1e4] ss:$16 sps:$4 sm:$0xff]   ;;  %v4557_v16 = vld [vmem:[%s6060_s3 + $0x1ec] ss:$16 sps:$4 sm:$0xff]  }
  0xce   : > { %1726 = vmatmul.mubr.bf16.gmra.mrb[4].mxu0 %v4456_v17  ;;  %1938 = vmatmul.mubr.bf16.gmra.mrb[4].mxu1 %v4456_v17  ;;  %v4552_v17 = vld [vmem:[%s6060_s3 + $0x1e0] ss:$16 sps:$4 sm:$0xff]  }
  0xcf   : > { %1768 = vmatprep.mubr.bf16.mxu0 %v4822_v18  ;;  %1980 = vmatprep.mubr.bf16.mxu1 %v4822_v18 }
  0xd6   : > { %3819 = vmatmul.mubr.msk.bf16.vlgmr.msra.gmra.mrb[0].mxu0 %vm1570_vm0, %v4460_v19  ;;  %3821 = vmatmul.mubr.msk.bf16.vlgmr.msra.gmra.mrb[0].mxu1 %vm1570_vm0, %v4460_v19  ;;  %v4560_v19 = vld [vmem:[%s6060_s3 + $0x204] ss:$16 sps:$4 sm:$0xff]  }
  0xd7   : > { %1778 = vmatprep.mubr.bf16.mxu0 %v4822_v18  ;;  %1990 = vmatprep.mubr.bf16.mxu1 %v4822_v18  ;;  %v4555_v18 = vld [vmem:[%s6060_s3 + $0x1e8] ss:$16 sps:$4 sm:$0xff]  }
  0xd8   : > { %2880 = vmatpush1.bf16.msra.mxu0 %v4462_v20  ;;  %2986 = vmatpush1.bf16.msra.mxu1 %v4465_v21  ;;  %v4563_v20 = vld [vmem:[%s6060_s3 + $0x20c] ss:$16 sps:$4 sm:$0xff]   ;;  %v500_v21 = vlaneseq }
  0xd9   : > { %2881 = vmatprep.subr.bf16.mxu0 %v4470_v22  ;;  %2987 = vmatprep.subr.bf16.mxu1 %v4473_v23 }
  0xda   : > { %v5685_v22 = vshrl.u32 %v500_v21, 7 }
  0xdc   : > { %2882 = vmatpush1.bf16.msra.mxu0 %v4468_v24  ;;  %2988 = vmatpush1.bf16.msra.mxu1 %v4471_v25  ;;  %v502_v23 = vsub.s32 0, %v5685_v22  ;;  %v510_v24 = vsub.s32 2, %v5685_v22  ;;  %v498_v25 = vld [vmem:[%s6059_s2] sm:$0xf] }
  0xdd   : > { %2883 = vmatprep.subr.bf16.mxu0 %v4476_v26  ;;  %2989 = vmatprep.subr.bf16.mxu1 %v4479_v27  ;;  %v506_v26 = vsub.s32 1, %v5685_v22  ;;  %v514_v27 = vsub.s32 3, %v5685_v22 }
  0xde   : > { %3820 = vmatmul.mubr.msk.bf16.gmra.mrb[4].mxu0 %vm1570_vm0, %v4461_v28  ;;  %3822 = vmatmul.mubr.msk.bf16.gmra.mrb[4].mxu1 %vm1570_vm0, %v4461_v28  ;;  %v503_v28 = vrot.slane %v498_v25, %v502_v23 }
  0xe0   : > { %2884 = vmatpush1.bf16.msra.mxu0 %v4474_v29  ;;  %2990 = vmatpush1.bf16.msra.mxu1 %v4477_v30  ;;  %v5698_v29 = vrot.slane %v498_v25, %v510_v24  ;;  %v5702_v30 = vrot.slane %v498_v25, %v506_v26 }
  0xe1   : > { %2885 = vmatprep.subr.bf16.mxu0 %v4482_v31  ;;  %2991 = vmatprep.subr.bf16.mxu1 %v4485_v32  ;;  %v5706_v31 = vrot.slane %v498_v25, %v514_v27 }
  0xe4   : > { %2886 = vmatpush1.bf16.msra.mxu0 %v4480_v33  ;;  %2992 = vmatpush1.bf16.msra.mxu1 %v4483_v34 }
  0xe5   : > { %2887 = vmatprep.subr.bf16.mxu0 %v4488_v35  ;;  %2993 = vmatprep.subr.bf16.mxu1 %v4491_v36 }
  0xe8   : > { %2888 = vmatpush1.bf16.msra.mxu0 %v4486_v37  ;;  %2994 = vmatpush1.bf16.msra.mxu1 %v4489_v38 }
  0xe9   : > { %2889 = vmatprep.subr.bf16.mxu0 %v4494_v39  ;;  %2995 = vmatprep.subr.bf16.mxu1 %v4497_v40 }
  0xec   : > { %2890 = vmatpush1.bf16.msra.mxu0 %v4492_v41  ;;  %2996 = vmatpush1.bf16.msra.mxu1 %v4495_v42 }
  0xed   : > { %2891 = vmatprep.subr.bf16.mxu0 %v4500_v43  ;;  %2997 = vmatprep.subr.bf16.mxu1 %v4503_v44 }
  0xf0   : > { %2892 = vmatpush1.bf16.msra.mxu0 %v4498_v45  ;;  %2998 = vmatpush1.bf16.msra.mxu1 %v4501_v46 }
  0xf1   : > { %2893 = vmatprep.subr.bf16.mxu0 %v4506_v47  ;;  %2999 = vmatprep.subr.bf16.mxu1 %v4509_v48 }
  0xf4   : > { %2894 = vmatpush1.bf16.msra.mxu0 %v4504_v49  ;;  %3000 = vmatpush1.bf16.msra.mxu1 %v4507_v50 }
  0xf5   : > { %2895 = vmatprep.subr.bf16.mxu0 %v4512_v51  ;;  %3001 = vmatprep.subr.bf16.mxu1 %v4515_v52 }
  0xf8   : > { %2896 = vmatpush1.bf16.msra.mxu0 %v4510_v53  ;;  %3002 = vmatpush1.bf16.msra.mxu1 %v4513_v54 }
  0xf9   : > { %2897 = vmatprep.subr.bf16.mxu0 %v4518_v55  ;;  %3003 = vmatprep.subr.bf16.mxu1 %v4521_v56 }
  0xfc   : > { %2898 = vmatpush1.bf16.msra.mxu0 %v4516_v57  ;;  %3004 = vmatpush1.bf16.msra.mxu1 %v4519_v58 }
  0xfd   : > { %2899 = vmatprep.subr.bf16.mxu0 %v4524_v59  ;;  %3005 = vmatprep.subr.bf16.mxu1 %v4527_v60 }
 0x100   : > { %2900 = vmatpush1.bf16.msra.mxu0 %v4522_v61  ;;  %3006 = vmatpush1.bf16.msra.mxu1 %v4525_v62 }
 0x101   : > { %2901 = vmatprep.subr.bf16.mxu0 %v4530_v63  ;;  %3007 = vmatprep.subr.bf16.mxu1 %v4533_v0 }
 0x104   : > { %2902 = vmatpush1.bf16.msra.mxu0 %v4528_v1  ;;  %3008 = vmatpush1.bf16.msra.mxu1 %v4531_v2 }
 0x105   : > { %2903 = vmatprep.subr.bf16.mxu0 %v4536_v3  ;;  %3009 = vmatprep.subr.bf16.mxu1 %v4539_v4 }
 0x108   : > { %2904 = vmatpush1.bf16.msra.mxu0 %v4534_v5  ;;  %3010 = vmatpush1.bf16.msra.mxu1 %v4537_v6 }
 0x109   : > { %2905 = vmatprep.subr.bf16.mxu0 %v4542_v7  ;;  %3011 = vmatprep.subr.bf16.mxu1 %v4545_v8 }
 0x10c   : > { %2906 = vmatpush1.bf16.msra.mxu0 %v4540_v9  ;;  %3012 = vmatpush1.bf16.msra.mxu1 %v4543_v10 }
 0x10d   : > { %2907 = vmatprep.subr.bf16.mxu0 %v4548_v11  ;;  %3013 = vmatprep.subr.bf16.mxu1 %v4551_v12 }
 0x110   : > { %2908 = vmatpush1.bf16.msra.mxu0 %v4546_v13  ;;  %3014 = vmatpush1.bf16.msra.mxu1 %v4549_v14 }
 0x111   : > { %2909 = vmatprep.subr.bf16.mxu0 %v4554_v15  ;;  %3015 = vmatprep.subr.bf16.mxu1 %v4557_v16 }
 0x114   : > { %2910 = vmatpush1.bf16.msra.mxu0 %v4552_v17  ;;  %3016 = vmatpush1.bf16.msra.mxu1 %v4555_v18 }
 0x115   : > { %2932 = vmatprep.subr.bf16.mxu0 %v4560_v19  ;;  %3038 = vmatprep.subr.bf16.mxu1 %v4563_v20 }
 0x1a9   : > { %v1770_v32 = vpop.f32.mrb[0].mxu0  ;;  %v1982_v33 = vpop.f32.mrb[0].mxu1 }
 0x1aa   : > { %v4042_v34 = vadd.f32 %v1770_v32, %v503_v28  ;;  %v4050_v35 = vadd.f32 %v1982_v33, %v5698_v29  ;;  %v1772_v36 = vpop.f32.mrb[1].mxu0  ;;  %v1984_v37 = vpop.f32.mrb[1].mxu1 }
 0x1ab   : > { %v4043_v38 = vadd.f32 %v1772_v36, %v5702_v30  ;;  %v4051_v39 = vadd.f32 %v1984_v37, %v5706_v31  ;;  %v1774_v40 = vpop.f32.mrb[2].mxu0  ;;  %v1986_v41 = vpop.f32.mrb[2].mxu1 }
 0x1ac   : > { %v2001_v42 = vsub.f32 0.0, %v4042_v34  ;;  %v2003_v43 = vsub.f32 0.0, %v4050_v35  ;;  %v4044_v44 = vadd.f32 %v1774_v40, %v503_v28  ;;  %v4052_v45 = vadd.f32 %v1986_v41, %v5698_v29  ;;  %v1776_v46 = vpop.f32.mrb[3].mxu0  ;;  %v1988_v47 = vpop.f32.mrb[3].mxu1 }
 0x1ad   : > { %v2002_v48 = vsub.f32 0.0, %v4043_v38  ;;  %v2004_v49 = vsub.f32 0.0, %v4051_v39  ;;  %v4045_v50 = vadd.f32 %v1776_v46, %v5702_v30  ;;  %v4053_v51 = vadd.f32 %v1988_v47, %v5706_v31 }
 0x1ae   : > { %v2017_v52 = vmul.f32 1.442695, %v2001_v42  ;;  %v2021_v53 = vmul.f32 1.442695, %v2003_v43  ;;  %v2005_v54 = vsub.f32 0.0, %v4044_v44  ;;  %v2007_v55 = vsub.f32 0.0, %v4052_v45 }
 0x1af   : > { %v2019_v56 = vmul.f32 1.442695, %v2002_v48  ;;  %v2023_v57 = vmul.f32 1.442695, %v2004_v49  ;;  %v2006_v58 = vsub.f32 0.0, %v4045_v50  ;;  %v2008_v59 = vsub.f32 0.0, %v4053_v51 }
 0x1b0   : > { %4686 = vpow2.f32 %v2017_v52  ;;  %v2025_v60 = vmul.f32 1.442695, %v2005_v54  ;;  %v2029_v61 = vmul.f32 1.442695, %v2007_v55 }
 0x1b1   : > { %4688 = vpow2.f32 %v2021_v53  ;;  %v1780_v62 = vpop.f32.mrb[4].mxu0  ;;  %v1992_v63 = vpop.f32.mrb[4].mxu1  ;;  %v2027_v0 = vmul.f32 1.442695, %v2006_v58  ;;  %v2031_v5 = vmul.f32 1.442695, %v2008_v59 }
 0x1b2   : > { %4690 = vpow2.f32 %v2019_v56  ;;  %v4046_v1 = vadd.f32 %v1780_v62, %v503_v28  ;;  %v4054_v2 = vadd.f32 %v1992_v63, %v5698_v29  ;;  %v1782_v3 = vpop.f32.mrb[5].mxu0  ;;  %v1994_v4 = vpop.f32.mrb[5].mxu1 }
 0x1b3   : > { %4692 = vpow2.f32 %v2023_v57  ;;  %v4047_v6 = vadd.f32 %v1782_v3, %v5702_v30  ;;  %v1784_v7 = vpop.f32.mrb[6].mxu0  ;;  %v1996_v8 = vpop.f32.mrb[6].mxu1  ;;  %v4055_v20 = vadd.f32 %v1994_v4, %v5706_v31 }
 0x1b4   : > { %4694 = vpow2.f32 %v2025_v60  ;;  %v2009_v9 = vsub.f32 0.0, %v4046_v1  ;;  %v2011_v10 = vsub.f32 0.0, %v4054_v2  ;;  %v4048_v11 = vadd.f32 %v1784_v7, %v503_v28  ;;  %v1786_v12 = vpop.f32.mrb[7].mxu0  ;;  %v1998_v13 = vpop.f32.mrb[7].mxu1  ;;  %v4561_v7 = vld [vmem:[%s6060_s3 + $0x208] ss:$16 sps:$4 sm:$0xff]  }
 0x1b5   : > { %4696 = vpow2.f32 %v2029_v61  ;;  %v2010_v14 = vsub.f32 0.0, %v4047_v6  ;;  %v2012_v36 = vsub.f32 0.0, %v4055_v20  ;;  %v4056_v39 = vadd.f32 %v1996_v8, %v5698_v29  ;;  %v4558_v6 = vld [vmem:[%s6060_s3 + $0x200] ss:$16 sps:$4 sm:$0xff]   ;;  %v4575_v20 = vld [vmem:[%s6060_s3 + $0x24c] ss:$16 sps:$4 sm:$0xff]  }
 0x1b6   : > { %4698 = vpow2.f32 %v2027_v0  ;;  %v2033_v15 = vmul.f32 1.442695, %v2009_v9  ;;  %v2037_v16 = vmul.f32 1.442695, %v2011_v10  ;;  %v2013_v17 = vsub.f32 0.0, %v4048_v11 }
 0x1b7   : > { %4700 = vpow2.f32 %v2031_v5  ;;  %v2035_v18 = vmul.f32 1.442695, %v2010_v14  ;;  %v4049_v42 = vadd.f32 %v1786_v12, %v5702_v30  ;;  %v4057_v45 = vadd.f32 %v1998_v13, %v5706_v31  ;;  %v4566_v9 = vld [vmem:[%s6060_s3 + $0x224] ss:$16 sps:$4 sm:$0xff]   ;;  %v4569_v10 = vld [vmem:[%s6060_s3 + $0x22c] ss:$16 sps:$4 sm:$0xff]  }
 0x1b8   : > { %4702 = vpow2.f32 %v2033_v15  ;;  %v2041_v19 = vmul.f32 1.442695, %v2013_v17  ;;  %v2039_v48 = vmul.f32 1.442695, %v2012_v36  ;;  %v2015_v51 = vsub.f32 0.0, %v4056_v39 }
 0x1b9   : > { %4704 = vpow2.f32 %v2037_v16  ;;  %v2014_v29 = vsub.f32 0.0, %v4049_v42  ;;  %v2016_v54 = vsub.f32 0.0, %v4057_v45  ;;  %v4564_v16 = vld [vmem:[%s6060_s3 + $0x220] ss:$16 sps:$4 sm:$0xff]   ;;  %v4567_v17 = vld [vmem:[%s6060_s3 + $0x228] ss:$16 sps:$4 sm:$0xff]  }
 0x1ba   : > { %v4687_v21 = vpop.eup %4686  ;;  %4706 = vpow2.f32 %v2035_v18  ;;  %v2045_v56 = vmul.f32 1.442695, %v2015_v51  ;;  %v4573_v36 = vld [vmem:[%s6060_s3 + $0x248] ss:$16 sps:$4 sm:$0xff]   ;;  %v4581_v39 = vld [vmem:[%s6060_s3 + $0x26c] ss:$16 sps:$4 sm:$0xff]  }
 0x1bb   : > { %v4689_v25 = vpop.eup %4688  ;;  %v2049_v32 = vadd.f32 1.0, %v4687_v21  ;;  %4708 = vpow2.f32 %v2041_v19  ;;  %v2043_v58 = vmul.f32 1.442695, %v2014_v29  ;;  %v2047_v60 = vmul.f32 1.442695, %v2016_v54 }
 0x1bc   : > { %v4691_v28 = vpop.eup %4690  ;;  %v2051_v33 = vadd.f32 1.0, %v4689_v25  ;;  %v4572_v19 = vld [vmem:[%s6060_s3 + $0x244] ss:$16 sps:$4 sm:$0xff]   ;;  %v4582_v45 = vld [vmem:[%s6060_s3 + $0x280] ss:$16 sps:$4 sm:$0xff]  }
 0x1bd   : > { %v4693_v34 = vpop.eup %4692  ;;  %4710 = vrcp.f32 %v2049_v32  ;;  %v2050_v35 = vadd.f32 1.0, %v4691_v28  ;;  %v4584_v42 = vld [vmem:[%s6060_s3 + $0x284] ss:$16 sps:$4 sm:$0xff]  }
 0x1be   : > { %v4695_v37 = vpop.eup %4694  ;;  %4712 = vrcp.f32 %v2051_v33  ;;  %v2052_v38 = vadd.f32 1.0, %v4693_v34 }
 0x1bf   : > { %v4697_v40 = vpop.eup %4696  ;;  %4714 = vrcp.f32 %v2050_v35  ;;  %v2053_v41 = vadd.f32 1.0, %v4695_v37  ;;  %v4570_v35 = vld [vmem:[%s6060_s3 + $0x240] ss:$16 sps:$4 sm:$0xff]  }
 0x1c0   : > { %v4699_v43 = vpop.eup %4698  ;;  %4716 = vrcp.f32 %v2052_v38  ;;  %v2055_v44 = vadd.f32 1.0, %v4697_v40  ;;  %v4578_v38 = vld [vmem:[%s6060_s3 + $0x264] ss:$16 sps:$4 sm:$0xff]   ;;  %v4576_v40 = vld [vmem:[%s6060_s3 + $0x260] ss:$16 sps:$4 sm:$0xff]  }
 0x1c1   : > { %v4701_v46 = vpop.eup %4700  ;;  %4718 = vrcp.f32 %v2053_v41  ;;  %v2054_v47 = vadd.f32 1.0, %v4699_v43  ;;  %v4579_v41 = vld [vmem:[%s6060_s3 + $0x268] ss:$16 sps:$4 sm:$0xff]   ;;  %v4587_v43 = vld [vmem:[%s6060_s3 + $0x28c] ss:$16 sps:$4 sm:$0xff]  }
 0x1c2   : > { %v4703_v49 = vpop.eup %4702  ;;  %4720 = vrcp.f32 %v2055_v44  ;;  %v2056_v50 = vadd.f32 1.0, %v4701_v46  ;;  %v4585_v46 = vld [vmem:[%s6060_s3 + $0x288] ss:$16 sps:$4 sm:$0xff]  }
 0x1c3   : > { %4722 = vrcp.f32 %v2054_v47  ;;  %v4705_v52 = vpop.eup %4704  ;;  %v2057_v53 = vadd.f32 1.0, %v4703_v49  ;;  %v4593_v49 = vld [vmem:[%s6060_s3 + $0x2ac] ss:$16 sps:$4 sm:$0xff]  }
 0x1c4   : > { %4724 = vrcp.f32 %v2056_v50  ;;  %v4707_v30 = vpop.eup %4706  ;;  %v2059_v12 = vadd.f32 1.0, %v4705_v52 }
 0x1c5   : > { %4726 = vpow2.f32 %v2039_v48  ;;  %v4709_v55 = vpop.eup %4708  ;;  %v2058_v13 = vadd.f32 1.0, %v4707_v30  ;;  %v4590_v48 = vld [vmem:[%s6060_s3 + $0x2a4] ss:$16 sps:$4 sm:$0xff]   ;;  %v4588_v30 = vld [vmem:[%s6060_s3 + $0x2a0] ss:$16 sps:$4 sm:$0xff]  }
 0x1c6   : > { %v2061_v31 = vadd.f32 1.0, %v4709_v55  ;;  %4728 = vrcp.f32 %v2057_v53  ;;  %v4591_v55 = vld [vmem:[%s6060_s3 + $0x2a8] ss:$16 sps:$4 sm:$0xff]  }
 0x1c7   : > { %v4711_v57 = vpop.eup %4710 }
 0x1c8   : > { %v4713_v59 = vpop.eup %4712  ;;  %4730 = vrcp.f32 %v2061_v31  ;;  %v4599_v31 = vld [vmem:[%s6060_s3 + $0x2cc] ss:$16 sps:$4 sm:$0xff]  }
 0x1c9   : > { %v4715_v61 = vpop.eup %4714  ;;  %4732 = vpow2.f32 %v2045_v56 }
 0x1ca   : > { %v4717_v62 = vpop.eup %4716  ;;  %4734 = vpow2.f32 %v2043_v58  ;;  %v4594_v58 = vld [vmem:[%s6060_s3 + $0x2c0] ss:$16 sps:$4 sm:$0xff]  }
 0x1cb   : > { %v4719_v63 = vpop.eup %4718  ;;  %4736 = vpow2.f32 %v2047_v60  ;;  %v4602_v60 = vld [vmem:[%s6060_s3 + $0x2e4] ss:$16 sps:$4 sm:$0xff]  }
 0x1cc   : > { %v4721_v0 = vpop.eup %4720  ;;  %v2081_v1 = vpack.c.bf16 %v4719_v63, %v4711_v57  ;;  %4738 = vrcp.f32 %v2059_v12  ;;  %v4596_v57 = vld [vmem:[%s6060_s3 + $0x2c4] ss:$16 sps:$4 sm:$0xff]   ;;  %v4603_v63 = vld [vmem:[%s6060_s3 + $0x2e8] ss:$16 sps:$4 sm:$0xff]  }
 0x1cd   : > { %v4723_v2 = vpop.eup %4722  ;;  %v5720_v3 = vpack.c.bf16 %v4721_v0, %v4713_v59  ;;  %4740 = vrcp.f32 %v2058_v13  ;;  %v4597_v59 = vld [vmem:[%s6060_s3 + $0x2c8] ss:$16 sps:$4 sm:$0xff]   ;;  %v4608_v0 = vld [vmem:[%s6060_s3 + $0x304] ss:$16 sps:$4 sm:$0xff]  }
 0x1ce   : > { %v4725_v4 = vpop.eup %4724  ;;  %v2082_v5 = vpack.c.bf16 %v4723_v2, %v4715_v61  ;;  %v4605_v61 = vld [vmem:[%s6060_s3 + $0x2ec] ss:$16 sps:$4 sm:$0xff]   ;;  %v4606_v2 = vld [vmem:[%s6060_s3 + $0x300] ss:$16 sps:$4 sm:$0xff]   ;;  %v4621_v12 = vld [vmem:[%s6060_s3 + $0x348] ss:$16 sps:$4 sm:$0xff]  }
 0x1cf   : > { %v4727_v8 = vpop.eup %4726  ;;  %v5734_v11 = vpack.c.bf16 %v4725_v4, %v4717_v62  ;;  %v4600_v62 = vld [vmem:[%s6060_s3 + $0x2e0] ss:$16 sps:$4 sm:$0xff]   ;;  %v4609_v4 = vld [vmem:[%s6060_s3 + $0x308] ss:$16 sps:$4 sm:$0xff]   ;;  %v4626_v13 = vld [vmem:[%s6060_s3 + $0x364] ss:$16 sps:$4 sm:$0xff]  }
 0x1d0   : > { %2911 = vmatprep.mubr.bf16.mxu0 %v2082_v5  ;;  %3017 = vmatprep.mubr.bf16.mxu1 %v2082_v5  ;;  %v4729_v14 = vpop.eup %4728  ;;  %v2060_v15 = vadd.f32 1.0, %v4727_v8  ;;  %v4614_v5 = vld [vmem:[%s6060_s3 + $0x324] ss:$16 sps:$4 sm:$0xff]   ;;  %v4615_v8 = vld [vmem:[%s6060_s3 + $0x328] ss:$16 sps:$4 sm:$0xff]  }
 0x1d1   : > { %2912 = vmatmul.mubr.bf16.vlgmr.msra.gmra.mrb[8].mxu0 %v2081_v1  ;;  %3018 = vmatmul.mubr.bf16.vlgmr.msra.gmra.mrb[8].mxu1 %v2081_v1  ;;  %v4611_v1 = vld [vmem:[%s6060_s3 + $0x30c] ss:$16 sps:$4 sm:$0xff]  }
 0x1d2   : > { %2933 = vmatpush1.bf16.msra.mxu0 %v4558_v6  ;;  %3039 = vmatpush1.bf16.msra.mxu1 %v4561_v7  ;;  %v4731_v18 = vpop.eup %4730  ;;  %4742 = vrcp.f32 %v2060_v15  ;;  %v4617_v6 = vld [vmem:[%s6060_s3 + $0x32c] ss:$16 sps:$4 sm:$0xff]   ;;  %v4612_v7 = vld [vmem:[%s6060_s3 + $0x320] ss:$16 sps:$4 sm:$0xff]  }
 0x1d3   : > { %2934 = vmatprep.subr.bf16.mxu0 %v4566_v9  ;;  %3040 = vmatprep.subr.bf16.mxu1 %v4569_v10  ;;  %v4733_v21 = vpop.eup %4732  ;;  %v2085_v25 = vpack.c.bf16 %v4731_v18, %v4729_v14  ;;  %v4620_v9 = vld [vmem:[%s6060_s3 + $0x344] ss:$16 sps:$4 sm:$0xff]   ;;  %v4623_v10 = vld [vmem:[%s6060_s3 + $0x34c] ss:$16 sps:$4 sm:$0xff]   ;;  %v4624_v15 = vld [vmem:[%s6060_s3 + $0x360] ss:$16 sps:$4 sm:$0xff]  }
 0x1d4   : > { %v4735_v32 = vpop.eup %4734  ;;  %v2063_v28 = vadd.f32 1.0, %v4733_v21  ;;  %v4629_v14 = vld [vmem:[%s6060_s3 + $0x36c] ss:$16 sps:$4 sm:$0xff]   ;;  %v4638_v21 = vld [vmem:[%s6060_s3 + $0x3a4] ss:$16 sps:$4 sm:$0xff]  }
 0x1d5   : > { %v4737_v33 = vpop.eup %4736  ;;  %v2062_v34 = vadd.f32 1.0, %v4735_v32  ;;  %v4635_v18 = vld [vmem:[%s6060_s3 + $0x38c] ss:$16 sps:$4 sm:$0xff]   ;;  %v4636_v32 = vld [vmem:[%s6060_s3 + $0x3a0] ss:$16 sps:$4 sm:$0xff]  }
 0x1d6   : > { %2935 = vmatpush1.bf16.msra.mxu0 %v4564_v16  ;;  %3041 = vmatpush1.bf16.msra.mxu1 %v4567_v17  ;;  %4744 = vrcp.f32 %v2063_v28  ;;  %v2064_v37 = vadd.f32 1.0, %v4737_v33  ;;  %v4739_v44 = vpop.eup %4738  ;;  %v4627_v16 = vld [vmem:[%s6060_s3 + $0x368] ss:$16 sps:$4 sm:$0xff]   ;;  %v4632_v17 = vld [vmem:[%s6060_s3 + $0x384] ss:$16 sps:$4 sm:$0xff]  }
 0x1d7   : > { %2936 = vmatprep.subr.bf16.mxu0 %v4572_v19  ;;  %3042 = vmatprep.subr.bf16.mxu1 %v4575_v20  ;;  %4746 = vrcp.f32 %v2062_v34  ;;  %v4741_v47 = vpop.eup %4740  ;;  %v4630_v19 = vld [vmem:[%s6060_s3 + $0x380] ss:$16 sps:$4 sm:$0xff]   ;;  %v4633_v20 = vld [vmem:[%s6060_s3 + $0x388] ss:$16 sps:$4 sm:$0xff]   ;;  %v4644_v33 = vld [vmem:[%s6060_s3 + $0x3c4] ss:$16 sps:$4 sm:$0xff]  }
 0x1d8   : > { %4748 = vrcp.f32 %v2064_v37  ;;  %v4639_v28 = vld [vmem:[%s6060_s3 + $0x3a8] ss:$16 sps:$4 sm:$0xff]   ;;  %v4647_v34 = vld [vmem:[%s6060_s3 + $0x3cc] ss:$16 sps:$4 sm:$0xff]   ;;  %v4650_v37 = vld [vmem:[%s6060_s3 + $0x3e4] ss:$16 sps:$4 sm:$0xff]  }
 0x1da   : > { %2937 = vmatpush1.bf16.msra.mxu0 %v4570_v35  ;;  %3043 = vmatpush1.bf16.msra.mxu1 %v4573_v36  ;;  %v4642_v35 = vld [vmem:[%s6060_s3 + $0x3c0] ss:$16 sps:$4 sm:$0xff]   ;;  %v4645_v36 = vld [vmem:[%s6060_s3 + $0x3c8] ss:$16 sps:$4 sm:$0xff]  }
 0x1db   : > { %2938 = vmatprep.subr.bf16.mxu0 %v4578_v38  ;;  %3044 = vmatprep.subr.bf16.mxu1 %v4581_v39  ;;  %v4653_v38 = vld [vmem:[%s6060_s3 + $0x3ec] ss:$16 sps:$4 sm:$0xff]   ;;  %v4648_v39 = vld [vmem:[%s6060_s3 + $0x3e0] ss:$16 sps:$4 sm:$0xff]  }
 0x1dc   : > { %v4743_v50 = vpop.eup %4742 }
 0x1de   : > { %2939 = vmatpush1.bf16.msra.mxu0 %v4576_v40  ;;  %3045 = vmatpush1.bf16.msra.mxu1 %v4579_v41  ;;  %v4651_v40 = vld [vmem:[%s6060_s3 + $0x3e8] ss:$16 sps:$4 sm:$0xff]   ;;  %v4654_v41 = vld [vmem:[%s6062_s5 + $0x40] sm:$0xff]  }
 0x1df   : > { %2940 = vmatprep.subr.bf16.mxu0 %v4584_v42  ;;  %3046 = vmatprep.subr.bf16.mxu1 %v4587_v43  ;;  %v4655_v42 = vld [vmem:[%s6062_s5 + $0xc0] sm:$0xff]  }
 0x1e0   : > { %v4745_v51 = vpop.eup %4744  ;;  %v4657_v43 = vld [vmem:[%s6062_s5 + $0x80] sm:$0xff]  }
 0x1e1   : > { %v4747_v29 = vpop.eup %4746  ;;  %v5784_v52 = vpack.c.bf16 %v4745_v51, %v4739_v44  ;;  %v4658_v44 = vld [vmem:[%s6062_s5 + $0x48] sm:$0xff]   ;;  %v4665_v51 = vld [vmem:[%s6062_s5 + $0x90] sm:$0xff]  }
 0x1e2   : > { %2941 = vmatpush1.bf16.msra.mxu0 %v4582_v45  ;;  %3047 = vmatpush1.bf16.msra.mxu1 %v4585_v46  ;;  %v4749_v53 = vpop.eup %4748  ;;  %v2086_v54 = vpack.c.bf16 %v4747_v29, %v4741_v47  ;;  %v4659_v45 = vld [vmem:[%s6062_s5 + $0xc8] sm:$0xff]   ;;  %v4666_v29 = vld [vmem:[%s6062_s5 + $0x58] sm:$0xff]  }
 0x1e3   : > { %2942 = vmatprep.subr.bf16.mxu0 %v4590_v48  ;;  %3048 = vmatprep.subr.bf16.mxu1 %v4593_v49  ;;  %v5792_v56 = vpack.c.bf16 %v4749_v53, %v4743_v50  ;;  %v4660_v46 = vld [vmem:[%s6062_s5 + $0x8] sm:$0xff]   ;;  %v4662_v48 = vld [vmem:[%s6062_s5 + $0x50] sm:$0xff]   ;;  %v4668_v53 = vld [vmem:[%s6062_s5 + $0x18] sm:$0xff]  }
 0x1e4   : > { %2921 = vmatprep.mubr.bf16.mxu0 %v2086_v54  ;;  %3027 = vmatprep.mubr.bf16.mxu1 %v2086_v54  ;;  %v4661_v47 = vld [vmem:[%s6062_s5 + $0x88] sm:$0xff]   ;;  %v4663_v49 = vld [vmem:[%s6062_s5 + $0xd0] sm:$0xff]   ;;  %v4669_v54 = vld [vmem:[%s6062_s5 + $0x98] sm:$0xff]  }
 0x1e5   : > { %2922 = vmatmul.mubr.bf16.gmra.mrb[12].mxu0 %v2085_v25  ;;  %3028 = vmatmul.mubr.bf16.gmra.mrb[12].mxu1 %v2085_v25  ;;  %v4641_v25 = vld [vmem:[%s6060_s3 + $0x3ac] ss:$16 sps:$4 sm:$0xff]   ;;  %v4664_v50 = vld [vmem:[%s6062_s5 + $0x10] sm:$0xff]  }
 0x1e6   : > { %2964 = vmatprep.mubr.bf16.mxu0 %v5734_v11  ;;  %3070 = vmatprep.mubr.bf16.mxu1 %v5734_v11  ;;  %v4618_v11 = vld [vmem:[%s6060_s3 + $0x340] ss:$16 sps:$4 sm:$0xff]  }
 0x1e7   : > { %2943 = vmatpush1.bf16.msra.mxu0 %v4588_v30  ;;  %3049 = vmatpush1.bf16.msra.mxu1 %v4591_v55  ;;  %v4670_v30 = vld [vmem:[%s6062_s5 + $0x60] sm:$0xff]  }
 0x1e8   : > { %2944 = vmatprep.subr.bf16.mxu0 %v4596_v57  ;;  %3050 = vmatprep.subr.bf16.mxu1 %v4599_v31  ;;  %v4671_v55 = vld [vmem:[%s6062_s5 + $0xe0] sm:$0xff]   ;;  %v4674_v31 = vld [vmem:[%s6062_s5 + $0x68] sm:$0xff]  }
 0x1e9   : > { %v4673_v57 = vld [vmem:[%s6062_s5 + $0xa0] sm:$0xff]  }
 0x1eb   : > { %2945 = vmatpush1.bf16.msra.mxu0 %v4594_v58  ;;  %3051 = vmatpush1.bf16.msra.mxu1 %v4597_v59  ;;  %v4675_v58 = vld [vmem:[%s6062_s5 + $0xe8] sm:$0xff]  }
 0x1ec   : > { %2946 = vmatprep.subr.bf16.mxu0 %v4602_v60  ;;  %3052 = vmatprep.subr.bf16.mxu1 %v4605_v61  ;;  %v4676_v59 = vld [vmem:[%s6062_s5 + $0x28] sm:$0xff]   ;;  %v4678_v61 = vld [vmem:[%s6062_s5 + $0x70] sm:$0xff]  }
 0x1ed   : > { %v4677_v60 = vld [vmem:[%s6062_s5 + $0xa8] sm:$0xff]  }
 0x1ef   : > { %2947 = vmatpush1.bf16.msra.mxu0 %v4600_v62  ;;  %3053 = vmatpush1.bf16.msra.mxu1 %v4603_v63  ;;  %v4679_v62 = vld [vmem:[%s6062_s5 + $0xf0] sm:$0xff]  }
 0x1f0   : > { %2948 = vmatprep.subr.bf16.mxu0 %v4608_v0  ;;  %3054 = vmatprep.subr.bf16.mxu1 %v4611_v1  ;;  %v4680_v63 = vld [vmem:[%s6062_s5 + $0x30] sm:$0xff]   ;;  %v4682_v1 = vld [vmem:[%s6062_s5 + $0x78] sm:$0xff]  }
 0x1f1   : > { %v4681_v0 = vld [vmem:[%s6062_s5 + $0xb0] sm:$0xff]  }
 0x1f3   : > { %2949 = vmatpush1.bf16.msra.mxu0 %v4606_v2  ;;  %3055 = vmatpush1.bf16.msra.mxu1 %v4609_v4  ;;  %v4683_v2 = vld [vmem:[%s6062_s5 + $0xf8] sm:$0xff]  }
 0x1f4   : > { %2950 = vmatprep.subr.bf16.mxu0 %v4614_v5  ;;  %3056 = vmatprep.subr.bf16.mxu1 %v4617_v6  ;;  %v4684_v4 = vld [vmem:[%s6062_s5 + $0x38] sm:$0xff]   ;;  %v2217_v6 = vld [vmem:[%s6061_s4] sm:$0xf] }
 0x1f5   : > { %v4685_v5 = vld [vmem:[%s6062_s5 + $0xb8] sm:$0xff]  }
 0x1f7   : > { %2951 = vmatpush1.bf16.msra.mxu0 %v4612_v7  ;;  %3057 = vmatpush1.bf16.msra.mxu1 %v4615_v8  ;;  %v2222_v7 = vrot.slane %v2217_v6, %v502_v23  ;;  %v6025_v8 = vrot.slane %v2217_v6, %v510_v24 }
 0x1f8   : > { %2952 = vmatprep.subr.bf16.mxu0 %v4620_v9  ;;  %3058 = vmatprep.subr.bf16.mxu1 %v4623_v10  ;;  %v6029_v9 = vrot.slane %v2217_v6, %v506_v26  ;;  %v6033_v10 = vrot.slane %v2217_v6, %v514_v27 }
 0x1fb   : > { %2953 = vmatpush1.bf16.msra.mxu0 %v4618_v11  ;;  %3059 = vmatpush1.bf16.msra.mxu1 %v4621_v12 }
 0x1fc   : > { %2954 = vmatprep.subr.bf16.mxu0 %v4626_v13  ;;  %3060 = vmatprep.subr.bf16.mxu1 %v4629_v14 }
 0x1ff   : > { %2955 = vmatpush1.bf16.msra.mxu0 %v4624_v15  ;;  %3061 = vmatpush1.bf16.msra.mxu1 %v4627_v16 }
 0x200   : > { %2956 = vmatprep.subr.bf16.mxu0 %v4632_v17  ;;  %3062 = vmatprep.subr.bf16.mxu1 %v4635_v18 }
 0x203   : > { %2957 = vmatpush1.bf16.msra.mxu0 %v4630_v19  ;;  %3063 = vmatpush1.bf16.msra.mxu1 %v4633_v20 }
 0x204   : > { %2958 = vmatprep.subr.bf16.mxu0 %v4638_v21  ;;  %3064 = vmatprep.subr.bf16.mxu1 %v4641_v25 }
 0x207   : > { %2959 = vmatpush1.bf16.msra.mxu0 %v4636_v32  ;;  %3065 = vmatpush1.bf16.msra.mxu1 %v4639_v28 }
 0x208   : > { %2960 = vmatprep.subr.bf16.mxu0 %v4644_v33  ;;  %3066 = vmatprep.subr.bf16.mxu1 %v4647_v34 }
 0x20b   : > { %2961 = vmatpush1.bf16.msra.mxu0 %v4642_v35  ;;  %3067 = vmatpush1.bf16.msra.mxu1 %v4645_v36 }
 0x20c   : > { %2962 = vmatprep.subr.bf16.mxu0 %v4650_v37  ;;  %3068 = vmatprep.subr.bf16.mxu1 %v4653_v38 }
 0x20f   : > { %2963 = vmatpush1.bf16.msra.mxu0 %v4648_v39  ;;  %3069 = vmatpush1.bf16.msra.mxu1 %v4651_v40 }
 0x210   : > { %3986 = vmatprep.subr.bf16.mxu0 %v4654_v41  ;;  %4014 = vmatprep.subr.bf16.mxu1 %v4655_v42 }
 0x212   : > { %2965 = vmatmul.mubr.bf16.vlgmr.msra.gmra.mrb[8].mxu0 %v5720_v3  ;;  %3071 = vmatmul.mubr.bf16.vlgmr.msra.gmra.mrb[8].mxu1 %v5720_v3  ;;  %v4656_v3 = vld [vmem:[%s6062_s5] sm:$0xff]  }
 0x213   : > { %2974 = vmatprep.mubr.bf16.mxu0 %v5792_v56  ;;  %3080 = vmatprep.mubr.bf16.mxu1 %v5792_v56  ;;  %v4672_v56 = vld [vmem:[%s6062_s5 + $0x20] sm:$0xff]  }
 0x214   : > { %3987 = vmatpush3.bf16.msra.mxu0 %v4656_v3  ;;  %4015 = vmatpush3.bf16.msra.mxu1 %v4657_v43 }
 0x215   : > { %3988 = vmatprep.subr.bf16.mxu0 %v4658_v44  ;;  %4016 = vmatprep.subr.bf16.mxu1 %v4659_v45 }
 0x218   : > { %3989 = vmatpush3.bf16.msra.mxu0 %v4660_v46  ;;  %4017 = vmatpush3.bf16.msra.mxu1 %v4661_v47 }
 0x219   : > { %3990 = vmatprep.subr.bf16.mxu0 %v4662_v48  ;;  %4018 = vmatprep.subr.bf16.mxu1 %v4663_v49 }
 0x21a   : > { %2975 = vmatmul.mubr.bf16.gmra.mrb[12].mxu0 %v5784_v52  ;;  %3081 = vmatmul.mubr.bf16.gmra.mrb[12].mxu1 %v5784_v52  ;;  %v4667_v52 = vld [vmem:[%s6062_s5 + $0xd8] sm:$0xff]  }
 0x21c   : > { %3991 = vmatpush3.bf16.msra.mxu0 %v4664_v50  ;;  %4019 = vmatpush3.bf16.msra.mxu1 %v4665_v51 }
 0x21d   : > { %3992 = vmatprep.subr.bf16.mxu0 %v4666_v29  ;;  %4020 = vmatprep.subr.bf16.mxu1 %v4667_v52 }
 0x220   : > { %3993 = vmatpush3.bf16.msra.mxu0 %v4668_v53  ;;  %4021 = vmatpush3.bf16.msra.mxu1 %v4669_v54 }
 0x221   : > { %3994 = vmatprep.subr.bf16.mxu0 %v4670_v30  ;;  %4022 = vmatprep.subr.bf16.mxu1 %v4671_v55 }
 0x224   : > { %3995 = vmatpush3.bf16.msra.mxu0 %v4672_v56  ;;  %4023 = vmatpush3.bf16.msra.mxu1 %v4673_v57 }
 0x225   : > { %3996 = vmatprep.subr.bf16.mxu0 %v4674_v31  ;;  %4024 = vmatprep.subr.bf16.mxu1 %v4675_v58 }
 0x228   : > { %3997 = vmatpush3.bf16.msra.mxu0 %v4676_v59  ;;  %4025 = vmatpush3.bf16.msra.mxu1 %v4677_v60 }
 0x229   : > { %3998 = vmatprep.subr.bf16.mxu0 %v4678_v61  ;;  %4026 = vmatprep.subr.bf16.mxu1 %v4679_v62 }
 0x22c   : > { %3999 = vmatpush3.bf16.msra.mxu0 %v4680_v63  ;;  %4027 = vmatpush3.bf16.msra.mxu1 %v4681_v0 }
 0x22d   : > { %4000 = vmatprep.subr.bf16.mxu0 %v4682_v1  ;;  %4028 = vmatprep.subr.bf16.mxu1 %v4683_v2 }
 0x230   : > { %4001 = vmatpush3.bf16.msra.mxu0 %v4684_v4  ;;  %4029 = vmatpush3.bf16.msra.mxu1 %v4685_v5 }
 0x2e5   : > { %v2966_v11 = vpop.f32.mrb[8].mxu0  ;;  %v3072_v12 = vpop.f32.mrb[8].mxu1 }
 0x2e6   : > { %v4058_v13 = vadd.f32 %v2966_v11, %v2222_v7  ;;  %v4066_v14 = vadd.f32 %v3072_v12, %v6025_v8  ;;  %v2968_v15 = vpop.f32.mrb[9].mxu0  ;;  %v3074_v16 = vpop.f32.mrb[9].mxu1 }
 0x2e7   : > { %v4059_v23 = vadd.f32 %v2968_v15, %v6029_v9  ;;  %v4067_v24 = vadd.f32 %v3074_v16, %v6033_v10  ;;  %v2970_v17 = vpop.f32.mrb[10].mxu0  ;;  %v3076_v18 = vpop.f32.mrb[10].mxu1 }
 0x2e8   : > { %v3091_v19 = vsub.f32 0.0, %v4058_v13  ;;  %v3093_v26 = vsub.f32 0.0, %v4066_v14  ;;  %v4060_v20 = vadd.f32 %v2970_v17, %v2222_v7  ;;  %v4068_v22 = vadd.f32 %v3076_v18, %v6025_v8  ;;  %v2972_v27 = vpop.f32.mrb[11].mxu0  ;;  %v3078_v21 = vpop.f32.mrb[11].mxu1 }
 0x2e9   : > { %v3092_v25 = vsub.f32 0.0, %v4059_v23  ;;  %v3094_v32 = vsub.f32 0.0, %v4067_v24  ;;  %v4061_v28 = vadd.f32 %v2972_v27, %v6029_v9  ;;  %v4069_v33 = vadd.f32 %v3078_v21, %v6033_v10 }
 0x2ea   : > { %v3107_v34 = vmul.f32 1.442695, %v3091_v19  ;;  %v3111_v35 = vmul.f32 1.442695, %v3093_v26  ;;  %v3095_v36 = vsub.f32 0.0, %v4060_v20  ;;  %v3097_v37 = vsub.f32 0.0, %v4068_v22 }
 0x2eb   : > { %v3109_v38 = vmul.f32 1.442695, %v3092_v25  ;;  %v3113_v39 = vmul.f32 1.442695, %v3094_v32  ;;  %v3096_v40 = vsub.f32 0.0, %v4061_v28  ;;  %v3098_v41 = vsub.f32 0.0, %v4069_v33 }
 0x2ec   : > { %4750 = vpow2.f32 %v3107_v34  ;;  %v3115_v42 = vmul.f32 1.442695, %v3095_v36  ;;  %v3119_v3 = vmul.f32 1.442695, %v3097_v37 }
 0x2ed   : > { %4752 = vpow2.f32 %v3111_v35  ;;  %v2976_v43 = vpop.f32.mrb[12].mxu0  ;;  %v3082_v44 = vpop.f32.mrb[12].mxu1  ;;  %v3117_v45 = vmul.f32 1.442695, %v3096_v40  ;;  %v3121_v50 = vmul.f32 1.442695, %v3098_v41 }
 0x2ee   : > { %4754 = vpow2.f32 %v3109_v38  ;;  %v4062_v46 = vadd.f32 %v2976_v43, %v2222_v7  ;;  %v4070_v47 = vadd.f32 %v3082_v44, %v6025_v8  ;;  %v2978_v48 = vpop.f32.mrb[13].mxu0  ;;  %v3084_v49 = vpop.f32.mrb[13].mxu1 }
 0x2ef   : > { %4756 = vpow2.f32 %v3113_v39  ;;  %v4063_v51 = vadd.f32 %v2978_v48, %v6029_v9  ;;  %v2980_v29 = vpop.f32.mrb[14].mxu0  ;;  %v3086_v52 = vpop.f32.mrb[14].mxu1  ;;  %v4071_v62 = vadd.f32 %v3084_v49, %v6033_v10 }
 0x2f0   : > { %4758 = vpow2.f32 %v3115_v42  ;;  %v3099_v53 = vsub.f32 0.0, %v4062_v46  ;;  %v3101_v54 = vsub.f32 0.0, %v4070_v47  ;;  %v4064_v30 = vadd.f32 %v2980_v29, %v2222_v7  ;;  %v2982_v55 = vpop.f32.mrb[15].mxu0  ;;  %v3088_v56 = vpop.f32.mrb[15].mxu1 }
 0x2f1   : > { %4760 = vpow2.f32 %v3119_v3  ;;  %v3100_v57 = vsub.f32 0.0, %v4063_v51  ;;  %v3102_v7 = vsub.f32 0.0, %v4071_v62  ;;  %v4072_v13 = vadd.f32 %v3086_v52, %v6025_v8 }
 0x2f2   : > { %4762 = vpow2.f32 %v3117_v45  ;;  %v3123_v31 = vmul.f32 1.442695, %v3099_v53  ;;  %v3127_v58 = vmul.f32 1.442695, %v3101_v54  ;;  %v3103_v59 = vsub.f32 0.0, %v4064_v30 }
 0x2f3   : > { %4764 = vpow2.f32 %v3121_v50  ;;  %v3125_v60 = vmul.f32 1.442695, %v3100_v57  ;;  %v4065_v16 = vadd.f32 %v2982_v55, %v6029_v9  ;;  %v4073_v17 = vadd.f32 %v3088_v56, %v6033_v10 }
 0x2f4   : > { %4766 = vpow2.f32 %v3123_v31  ;;  %v3131_v61 = vmul.f32 1.442695, %v3103_v59  ;;  %v3129_v26 = vmul.f32 1.442695, %v3102_v7  ;;  %v3105_v27 = vsub.f32 0.0, %v4072_v13 }
 0x2f5   : > { %4768 = vpow2.f32 %v3127_v58  ;;  %v3104_v8 = vsub.f32 0.0, %v4065_v16  ;;  %v3106_v32 = vsub.f32 0.0, %v4073_v17 }
 0x2f6   : > { %v4751_v63 = vpop.eup %4750  ;;  %4770 = vpow2.f32 %v3125_v60  ;;  %v3135_v33 = vmul.f32 1.442695, %v3105_v27 }
 0x2f7   : > { %v4753_v0 = vpop.eup %4752  ;;  %v3139_v1 = vadd.f32 1.0, %v4751_v63  ;;  %4772 = vpow2.f32 %v3131_v61  ;;  %v3133_v35 = vmul.f32 1.442695, %v3104_v8  ;;  %v3137_v37 = vmul.f32 1.442695, %v3106_v32 }
 0x2f8   : > { %v4755_v2 = vpop.eup %4754  ;;  %v3141_v4 = vadd.f32 1.0, %v4753_v0 }
 0x2f9   : > { %v4757_v5 = vpop.eup %4756  ;;  %4774 = vrcp.f32 %v3139_v1  ;;  %v3140_v6 = vadd.f32 1.0, %v4755_v2 }
 0x2fa   : > { %v4759_v11 = vpop.eup %4758  ;;  %4776 = vrcp.f32 %v3141_v4  ;;  %v3142_v12 = vadd.f32 1.0, %v4757_v5  ;;  %v3951_v5 = vld [vmem:[%s6063_s6] ss:$0 sm:$0xff] }
 0x2fb   : > { %v4761_v14 = vpop.eup %4760  ;;  %4778 = vrcp.f32 %v3140_v6  ;;  %v3143_v15 = vadd.f32 1.0, %v4759_v11 }
 0x2fc   : > { %v4763_v23 = vpop.eup %4762  ;;  %4780 = vrcp.f32 %v3142_v12  ;;  %v3145_v24 = vadd.f32 1.0, %v4761_v14 }
 0x2fd   : > { %v4765_v18 = vpop.eup %4764  ;;  %4782 = vrcp.f32 %v3143_v15  ;;  %v3144_v19 = vadd.f32 1.0, %v4763_v23 }
 0x2fe   : > { %v4767_v20 = vpop.eup %4766  ;;  %4784 = vrcp.f32 %v3145_v24  ;;  %v3146_v22 = vadd.f32 1.0, %v4765_v18 }
 0x2ff   : > { %4786 = vrcp.f32 %v3144_v19  ;;  %v4769_v21 = vpop.eup %4768  ;;  %v3147_v25 = vadd.f32 1.0, %v4767_v20 }
 0x300   : > { %4788 = vrcp.f32 %v3146_v22  ;;  %v4771_v9 = vpop.eup %4770  ;;  %v3149_v48 = vadd.f32 1.0, %v4769_v21 }
 0x301   : > { %4790 = vpow2.f32 %v3129_v26  ;;  %v4773_v28 = vpop.eup %4772  ;;  %v3148_v49 = vadd.f32 1.0, %v4771_v9 }
 0x302   : > { %v3151_v10 = vadd.f32 1.0, %v4773_v28  ;;  %4792 = vrcp.f32 %v3147_v25 }
 0x303   : > { %v4775_v34 = vpop.eup %4774 }
 0x304   : > { %v4777_v36 = vpop.eup %4776  ;;  %4794 = vrcp.f32 %v3151_v10 }
 0x305   : > { %v4779_v38 = vpop.eup %4778  ;;  %4796 = vpow2.f32 %v3135_v33 }
 0x306   : > { %v4781_v39 = vpop.eup %4780  ;;  %4798 = vpow2.f32 %v3133_v35 }
 0x307   : > { %v4783_v40 = vpop.eup %4782  ;;  %4800 = vpow2.f32 %v3137_v37 }
 0x308   : > { %v4785_v41 = vpop.eup %4784  ;;  %v3171_v42 = vpack.c.bf16 %v4783_v40, %v4775_v34  ;;  %4802 = vrcp.f32 %v3149_v48 }
 0x309   : > { %v4787_v3 = vpop.eup %4786  ;;  %v3173_v43 = vpack.c.bf16 %v4785_v41, %v4777_v36  ;;  %4804 = vrcp.f32 %v3148_v49 }
 0x30a   : > { %v4789_v44 = vpop.eup %4788  ;;  %v3172_v45 = vpack.c.bf16 %v4787_v3, %v4779_v38 }
 0x30b   : > { %v4791_v46 = vpop.eup %4790  ;;  %v3174_v47 = vpack.c.bf16 %v4789_v44, %v4781_v39 }
 0x30c   : > { %3474 = vmatprep.mubr.bf16.mxu0 %v3172_v45  ;;  %v4793_v50 = vpop.eup %4792  ;;  %v3150_v51 = vadd.f32 1.0, %v4791_v46 }
 0x30d   : > { %3523 = vmatprep.mubr.bf16.mxu1 %v3174_v47  ;;  %3475 = vmatmul.mubr.bf16.vlgmr.msra.gmra.mrb[16].mxu0 %v3171_v42 }
 0x30e   : > { %3524 = vmatmul.mubr.bf16.vlgmr.msra.gmra.mrb[16].mxu1 %v3173_v43  ;;  %v4795_v29 = vpop.eup %4794  ;;  %4806 = vrcp.f32 %v3150_v51 }
 0x30f   : > { %v4797_v52 = vpop.eup %4796  ;;  %v3175_v53 = vpack.c.bf16 %v4795_v29, %v4793_v50 }
 0x310   : > { %v4799_v54 = vpop.eup %4798  ;;  %v3153_v30 = vadd.f32 1.0, %v4797_v52 }
 0x311   : > { %v4801_v55 = vpop.eup %4800  ;;  %v3152_v56 = vadd.f32 1.0, %v4799_v54 }
 0x312   : > { %4808 = vrcp.f32 %v3153_v30  ;;  %v3154_v57 = vadd.f32 1.0, %v4801_v55  ;;  %v4803_v31 = vpop.eup %4802 }
 0x313   : > { %4810 = vrcp.f32 %v3152_v56  ;;  %v4805_v58 = vpop.eup %4804 }
 0x314   : > { %4812 = vrcp.f32 %v3154_v57 }
 0x318   : > { %v4807_v59 = vpop.eup %4806 }
 0x31c   : > { %v4809_v60 = vpop.eup %4808 }
 0x31d   : > { %v4811_v61 = vpop.eup %4810  ;;  %v3177_v62 = vpack.c.bf16 %v4809_v60, %v4803_v31 }
 0x31e   : > { %v4813_v63 = vpop.eup %4812  ;;  %v3176_v0 = vpack.c.bf16 %v4811_v61, %v4805_v58 }
 0x31f   : > { %v3178_v1 = vpack.c.bf16 %v4813_v63, %v4807_v59 }
 0x320   : > { %3482 = vmatprep.mubr.bf16.mxu0 %v3176_v0 }
 0x321   : > { %3531 = vmatprep.mubr.bf16.mxu1 %v3178_v1  ;;  %3483 = vmatmul.mubr.bf16.gmra.mrb[20].mxu0 %v3175_v53 }
 0x322   : > { %3532 = vmatmul.mubr.bf16.gmra.mrb[20].mxu1 %v3177_v62 }
 0x3e0   : > { %v4002_v2 = vpop.f32.mrb[16].mxu0 }
 0x3e1   : > { %v4030_v4 = vpop.f32.mrb[16].mxu1  ;;  %v4003_v6 = vpop.f32.mrb[17].mxu0 }
 0x3e2   : > { %v4004_v7 = vadd.f32 %v4003_v6, %v4002_v2  ;;  %v4031_v11 = vpop.f32.mrb[17].mxu1  ;;  %v4005_v12 = vpop.f32.mrb[18].mxu0 }
 0x3e3   : > { %v4032_v13 = vadd.f32 %v4031_v11, %v4030_v4  ;;  %v4033_v14 = vpop.f32.mrb[18].mxu1  ;;  %v4006_v15 = vpop.f32.mrb[19].mxu0 }
 0x3e4   : > { %v3477_v16 = vadd.f32 %v4004_v7, %v3951_v5  ;;  %v4007_v23 = vadd.f32 %v4006_v15, %v4005_v12  ;;  %v4034_v24 = vpop.f32.mrb[19].mxu1 }
 0x3e5   : > { %v4035_v17 = vadd.f32 %v4034_v24, %v4033_v14 }
 0x3e6   : > { %v3526_v18 = vadd.f32 %v4032_v13, %v3477_v16  ;;  %v3480_v19 = vadd.f32 %v4007_v23, %v3951_v5 }
 0x3e8   : > { %3540 = vst [vmem:[%s283_s25] sm:$0xff] %v3526_v18  ;;  %v3529_v26 = vadd.f32 %v4035_v17, %v3480_v19 }
 0x3ea   : > { %3541 = vst [vmem:[%s283_s25 + $0x8] sm:$0xff] %v3529_v26 }
 0x3f4   : > { %v4008_v20 = vpop.f32.mrb[20].mxu0 }
 0x3f5   : > { %v4036_v22 = vpop.f32.mrb[20].mxu1  ;;  %v4009_v27 = vpop.f32.mrb[21].mxu0 }
 0x3f6   : > { %v4010_v8 = vadd.f32 %v4009_v27, %v4008_v20  ;;  %v4037_v21 = vpop.f32.mrb[21].mxu1  ;;  %v4011_v25 = vpop.f32.mrb[22].mxu0 }
 0x3f7   : > { %v4038_v32 = vadd.f32 %v4037_v21, %v4036_v22  ;;  %v4039_v9 = vpop.f32.mrb[22].mxu1  ;;  %v4012_v28 = vpop.f32.mrb[23].mxu0 }
 0x3f8   : > { %v3485_v33 = vadd.f32 %v4010_v8, %v3951_v5  ;;  %v4013_v34 = vadd.f32 %v4012_v28, %v4011_v25  ;;  %v4040_v10 = vpop.f32.mrb[23].mxu1 }
 0x3f9   : > { %v4041_v35 = vadd.f32 %v4040_v10, %v4039_v9 }
 0x3fa   : > { %v3534_v36 = vadd.f32 %v4038_v32, %v3485_v33  ;;  %v3488_v37 = vadd.f32 %v4013_v34, %v3951_v5 }
 0x3fc   : > { %3542 = vst [vmem:[%s283_s25 + $0x10] sm:$0xff] %v3534_v36  ;;  %v3537_v38 = vadd.f32 %v4041_v35, %v3488_v37 }
 0x3fe   : > { %3543 = vst [vmem:[%s283_s25 + $0x18] sm:$0xff] %v3537_v38 }
 0x3ff PF: > { %s17_s24 = sadd.s32 1, %s4820_s24  }
 0x400   : > { %p14_p4 = scmp.ge.s32.totalorder %s17_s24, 4  }
 0x402   :  { %16 = sbr.rel (!%p14_p4) target bundleno = 1 (0x1), region = 78 }

</bundles_post_ra>
